<compile_context>
chip_gen: v7x
topology: tpu7x:2x2x1
jax: 0.10.0
libtpu: 0.0.40
codegen_flags: <defaults>
</compile_context>

<pallas_src>
import jax
import jax.numpy as jnp
from jax.experimental import pallas as pl
from jax.experimental.pallas import tpu as pltpu

# ---------------- model dims (small, consistent with the module) -------------
B = 2                 # batch
T = 8                 # sequence_len
C = 32                # n_embd
H = 4                 # n_heads
D = C // H            # head_size = 8
L = 2                 # n_blocks
VOCAB = 128           # vocab_size (logits last dim is lane-dense)
HID = 4 * C           # FFN hidden = 128
M = B * T             # flattened rows fed to the MXU
EPS = 1e-5            # nn.LayerNorm default
SCALE = D ** (-0.5)

assert HID == VOCAB   # (L+1, HID) packing of [b1 rows ; blm row] relies on this


def _floordiv(x, step, count):
    """Elementwise x // step for 0 <= x < step*count using compares only
    (avoids depending on vector integer div/rem lowering; tiny, hoisted)."""
    acc = jnp.zeros(x.shape, jnp.int32)
    for t in range(1, count):
        acc = acc + jnp.where(x >= t * step, 1, 0)
    return acc


def decoder_kernel(idx_ref, tab_ref, vecs_ref, wslab_ref, w2_ref, bvec_ref,
                   wlm_ref, o_ref):
    """Single invocation: full decoder on the flattened (B*T, C) token slab."""
    f32 = jnp.float32
    bf16 = jnp.bfloat16

    # ---- embeddings: exact gather via one-hot matmul + hoisted pos-emb slab --
    tok_oh = (idx_ref[...] ==
              jax.lax.broadcasted_iota(jnp.int32, (M, VOCAB), 1)).astype(f32)
    x = (jnp.dot(tok_oh, tab_ref[M:M + VOCAB, :], preferred_element_type=f32)
         + tab_ref[0:M, :])                                            # (M, C)

    # ---- hoisted constants (built once, reused by the unrolled layer loop) ---
    # block-diagonal (per-sequence) causal additive bias on the (M, H*M) slab
    ri = jax.lax.broadcasted_iota(jnp.int32, (M, H * M), 0)
    ci = jax.lax.broadcasted_iota(jnp.int32, (M, H * M), 1)
    cj = ci - M * _floordiv(ci, M, H)               # kv row index = ci % M
    same_seq = _floordiv(ri, T, B) == _floordiv(cj, T, B)
    keep = same_seq & (ri >= cj)
    # every row keeps its diagonal, so exp(-inf - finite) below is 0, never NaN
    bias_bd = jnp.where(keep, 0.0, -jnp.inf).astype(f32)               # (M, H*M)

    # head-selection masks for the block-diagonal K / V layouts
    kr = jax.lax.broadcasted_iota(jnp.int32, (C, H * M), 0)
    kc = jax.lax.broadcasted_iota(jnp.int32, (C, H * M), 1)
    kmask = (_floordiv(kr, D, H) == _floordiv(kc, M, H)).astype(f32)   # (C, H*M)
    vr = jax.lax.broadcasted_iota(jnp.int32, (H * M, C), 0)
    vc = jax.lax.broadcasted_iota(jnp.int32, (H * M, C), 1)
    vmask = (_floordiv(vr, M, H) == _floordiv(vc, D, H)).astype(f32)   # (H*M, C)
    vmask_bf = vmask.astype(bf16)

    def layer_norm(z, g, b):
        mu = jnp.mean(z, axis=-1, keepdims=True)
        var = jnp.mean((z - mu) ** 2, axis=-1, keepdims=True)
        return (z - mu) * jax.lax.rsqrt(var + EPS) * g + b

    for l in range(L):                       # static unroll over decoder blocks
        vl = vecs_ref[l]                     # (6, C) packed small vectors
        ln1_g, ln1_b = vl[0:1], vl[1:2]
        b_proj = vl[2:3]
        ln2_g, ln2_b = vl[3:4], vl[4:5]
        b_ff2 = vl[5:6]
        b_ff1 = bvec_ref[l:l + 1, :]         # (1, HID)

        w_qkv = wslab_ref[l, :, 0:3 * C]             # (C, 3C) bf16, Wq pre-scaled
        w_proj = wslab_ref[l, :, 3 * C:4 * C]        # (C, C)   bf16
        w_ff1 = wslab_ref[l, :, 4 * C:4 * C + HID]   # (C, HID) bf16

        # ---- multi-head causal self-attention (lane-dense, no per-head loop) -
        xn = layer_norm(x, ln1_g, ln1_b)
        qkv = jnp.dot(xn.astype(bf16), w_qkv, preferred_element_type=f32)  # (M,3C)
        q = qkv[:, 0 * C:1 * C]
        k = qkv[:, 1 * C:2 * C]
        v = qkv[:, 2 * C:3 * C]

        # block-diagonal K (C, H*M) and V (H*M, C): one small 2-D transpose,
        # lane/sublane replication via concat, hoisted head masks.
        k_bd = jnp.concatenate([k.T] * H, axis=1) * kmask              # (C, H*M)
        v_bd = jnp.concatenate([v] * H, axis=0) * vmask                # (H*M, C)

        # scores: one canonical (M,C)x(C,H*M) MXU matmul; 1/sqrt(D) already in Wq
        scores = jnp.dot(q.astype(bf16), k_bd.astype(bf16),
                         preferred_element_type=f32) + bias_bd         # (M, H*M)
        # softmax per (row, head): subtracting the full-row max is exact because
        # it is constant within every M-lane head segment of the row.
        p = jnp.exp(scores - jnp.max(scores, axis=-1, keepdims=True))
        numer = jnp.dot(p.astype(bf16), v_bd.astype(bf16),
                        preferred_element_type=f32)                    # (M, C)
        denom = jnp.dot(p.astype(bf16), vmask_bf,
                        preferred_element_type=f32)                    # (M, C)
        attn = numer * pl.reciprocal(denom, approx=False)
        sa = jnp.dot(attn.astype(bf16), w_proj,
                     preferred_element_type=f32) + b_proj
        # dropout: identity in eval mode
        x = x + sa

        # ---- feed-forward ----
        xn2 = layer_norm(x, ln2_g, ln2_b)
        hdn = jnp.dot(xn2.astype(bf16), w_ff1, preferred_element_type=f32) + b_ff1
        hdn = jnp.maximum(hdn, 0.0)
        ff = jnp.dot(hdn.astype(bf16), w2_ref[l],
                     preferred_element_type=f32) + b_ff2
        # dropout: identity in eval mode
        x = x + ff

    # ---- LM head: lane-dense (M, VOCAB) = (16, 128) output slab ----
    blm = bvec_ref[L:L + 1, :]                                         # (1, VOCAB)
    logits = jnp.dot(x.astype(bf16), wlm_ref[...],
                     preferred_element_type=f32) + blm
    o_ref[...] = logits.astype(o_ref.dtype)


def transformer_decoder(idx, params):
    """idx: (B, T) int32 token ids. Returns logits (B, T, VOCAB) float32."""
    bf16 = jnp.bfloat16

    idx_flat = idx.reshape(M, 1).astype(jnp.int32)

    # hoisted position-embedding slab (positions are always arange(T)), fused
    # with the token table: rows [0:M) = per-row pos emb, rows [M:) = tok table.
    pos_slab = jnp.tile(params["pos_tab"][:T], (B, 1))                 # (M, C)
    tab = jnp.concatenate([pos_slab, params["tok_tab"]], axis=0)       # (M+VOCAB, C)

    # fused per-layer weight slab [Wq*scale | Wk | Wv | Wproj | W1], bf16
    wq = params["wqkv"][:, :, :C] * SCALE          # fold 1/sqrt(D) into Wq
    wkv = params["wqkv"][:, :, C:]
    wslab = jnp.concatenate(
        [wq, wkv, params["wproj"], params["w1"]], axis=2).astype(bf16)  # (L,C,4C+HID)
    w2 = params["w2"].astype(bf16)                                      # (L, HID, C)
    wlm = params["wlm"].astype(bf16)                                    # (C, VOCAB)
    bvec = jnp.concatenate([params["b1"][:, 0, :], params["blm"]],
                           axis=0)                                      # (L+1, HID)

    inputs = [idx_flat, tab, params["vecs"], wslab, w2, bvec, wlm]
    vmem = pltpu.MemorySpace.VMEM
    logits_flat = pl.pallas_call(
        decoder_kernel,
        out_shape=jax.ShapeDtypeStruct((M, VOCAB), jnp.float32),
        in_specs=[pl.BlockSpec(memory_space=vmem) for _ in inputs],
        out_specs=pl.BlockSpec(memory_space=vmem),
    )(*inputs)
    return logits_flat.reshape(B, T, VOCAB)


def reference_decoder(idx, p):
    """Pure-JAX f32 reference with the PyTorch module's semantics."""
    def ln(z, g, b):
        mu = jnp.mean(z, -1, keepdims=True)
        var = jnp.mean((z - mu) ** 2, -1, keepdims=True)
        return (z - mu) / jnp.sqrt(var + EPS) * g + b

    x = p["tok_tab"][idx] + p["pos_tab"][jnp.arange(T)][None]           # (B, T, C)
    tril = jnp.tril(jnp.ones((T, T), bool))
    for l in range(L):
        vl = p["vecs"][l]
        xn = ln(x, vl[0], vl[1])
        qkv = xn @ p["wqkv"][l]
        q, k, v = qkv[..., :C], qkv[..., C:2 * C], qkv[..., 2 * C:]
        qh = q.reshape(B, T, H, D).transpose(0, 2, 1, 3)
        kh = k.reshape(B, T, H, D).transpose(0, 2, 1, 3)
        vh = v.reshape(B, T, H, D).transpose(0, 2, 1, 3)
        wei = jnp.einsum("bhqd,bhkd->bhqk", qh, kh) * SCALE
        wei = jnp.where(tril, wei, -jnp.inf)
        wei = jax.nn.softmax(wei, axis=-1)
        sa = jnp.einsum("bhqk,bhkd->bhqd", wei, vh)
        sa = sa.transpose(0, 2, 1, 3).reshape(B, T, C)
        x = x + sa @ p["wproj"][l] + vl[2]
        xn2 = ln(x, vl[3], vl[4])
        hdn = jnp.maximum(xn2 @ p["w1"][l] + p["b1"][l, 0], 0.0)
        x = x + hdn @ p["w2"][l] + vl[5]
    return x @ p["wlm"] + p["blm"][0]


def init_params(key):
    ks = jax.random.split(key, 10)
    s = 0.05
    nrm = lambda k, shape, scale: (scale * jax.random.normal(k, shape)).astype(jnp.float32)

    # packed per-layer vectors: [ln1_g, ln1_b, b_proj, ln2_g, ln2_b, b_ff2]
    vecs = nrm(ks[8], (L, 6, C), s)
    vecs = vecs.at[:, 0].add(1.0)    # ln1 gamma ~ 1
    vecs = vecs.at[:, 3].add(1.0)    # ln2 gamma ~ 1

    return {
        "tok_tab": nrm(ks[0], (VOCAB, C), 0.1),
        "pos_tab": nrm(ks[1], (T, C), 0.1),
        "wqkv":    nrm(ks[2], (L, C, 3 * C), s),   # fused [Wq | Wk | Wv], x@W form
        "wproj":   nrm(ks[3], (L, C, C), s),
        "w1":      nrm(ks[4], (L, C, HID), s),
        "b1":      nrm(ks[5], (L, 1, HID), s),
        "w2":      nrm(ks[6], (L, HID, C), s),
        "wlm":     nrm(ks[7], (C, VOCAB), s),
        "blm":     nrm(ks[9], (1, VOCAB), s),
        "vecs":    vecs,
    }


if __name__ == "__main__":
    key = jax.random.PRNGKey(0)
    k_idx, k_p = jax.random.split(key)
    idx = jax.random.randint(k_idx, (B, T), 0, VOCAB, dtype=jnp.int32)
    params = init_params(k_p)

    logits = transformer_decoder(idx, params)
    logits = jax.block_until_ready(logits)

    ref = reference_decoder(idx, params)
    assert logits.shape == (B, T, VOCAB)
    max_err = float(jnp.max(jnp.abs(logits - ref)))
    # bf16 MXU operands (f32 accumulation) vs. the f32 reference -> loose tolerance
    assert jnp.allclose(logits, ref, rtol=2e-2, atol=2e-2), max_err

    print("KERNEL_OK")
</pallas_src>

<mosaic_0001>
module attributes {stable_mosaic.version = 11 : i64} {
  func.func @decoder_kernel(%arg0: memref<16x1xi32, #tpu.memory_space<vmem>>, %arg1: memref<144x32xf32, #tpu.memory_space<vmem>>, %arg2: memref<2x6x32xf32, #tpu.memory_space<vmem>>, %arg3: memref<2x32x256xbf16, #tpu.memory_space<vmem>>, %arg4: memref<2x128x32xbf16, #tpu.memory_space<vmem>>, %arg5: memref<3x128xf32, #tpu.memory_space<vmem>>, %arg6: memref<32x128xbf16, #tpu.memory_space<vmem>>, %arg7: memref<16x128xf32, #tpu.memory_space<vmem>>) attributes {dimension_semantics = [], scalar_prefetch = 0 : i64, scratch_operands = 0 : i64, tpu.core_type = #tpu.core_type<tc>} {
    %c0 = arith.constant 0 : index
    %c0_0 = arith.constant 0 : index
    %0 = vector.load %arg0[%c0, %c0_0] : memref<16x1xi32, #tpu.memory_space<vmem>>, vector<16x1xi32>
    %1 = tpu.iota {dimensions = array<i32: 1>} : vector<16x128xi32>
    %2 = vector.broadcast %0 : vector<16x1xi32> to vector<16x128xi32>
    %3 = arith.cmpi eq, %2, %1 : vector<16x128xi32>
    %4 = arith.extui %3 : vector<16x128xi1> to vector<16x128xi32>
    %5 = arith.sitofp %4 : vector<16x128xi32> to vector<16x128xf32>
    %c16 = arith.constant 16 : index
    %c0_1 = arith.constant 0 : index
    %6 = vector.load %arg1[%c16, %c0_1] : memref<144x32xf32, #tpu.memory_space<vmem>>, vector<128x32xf32>
    %cst = arith.constant dense<0.000000e+00> : vector<16x32xf32>
    %7 = tpu.matmul %5, %6, %cst {dimension_numbers = #tpu.dot_dimension_numbers<[1], [0], [0], [1], [0, 0, 1, 1], [], []>} : vector<16x128xf32>, vector<128x32xf32>, vector<16x32xf32> -> vector<16x32xf32>
    %c0_2 = arith.constant 0 : index
    %c0_3 = arith.constant 0 : index
    %8 = vector.load %arg1[%c0_2, %c0_3] : memref<144x32xf32, #tpu.memory_space<vmem>>, vector<16x32xf32>
    %9 = arith.addf %7, %8 : vector<16x32xf32>
    %10 = tpu.iota {dimensions = array<i32: 0>} : vector<16x64xi32>
    %11 = tpu.iota {dimensions = array<i32: 1>} : vector<16x64xi32>
    %c0_i32 = arith.constant 0 : i32
    %12 = vector.broadcast %c0_i32 : i32 to vector<16x64xi32>
    %c16_i32 = arith.constant 16 : i32
    %13 = vector.broadcast %c16_i32 : i32 to vector<16x64xi32>
    %14 = arith.cmpi sge, %11, %13 : vector<16x64xi32>
    %c1_i32 = arith.constant 1 : i32
    %c0_i32_4 = arith.constant 0 : i32
    %15 = vector.broadcast %c1_i32 : i32 to vector<16x64xi32>
    %16 = vector.broadcast %c0_i32_4 : i32 to vector<16x64xi32>
    %17 = arith.select %14, %15, %16 : vector<16x64xi1>, vector<16x64xi32>
    %18 = arith.addi %12, %17 : vector<16x64xi32>
    %c32_i32 = arith.constant 32 : i32
    %19 = vector.broadcast %c32_i32 : i32 to vector<16x64xi32>
    %20 = arith.cmpi sge, %11, %19 : vector<16x64xi32>
    %c1_i32_5 = arith.constant 1 : i32
    %c0_i32_6 = arith.constant 0 : i32
    %21 = vector.broadcast %c1_i32_5 : i32 to vector<16x64xi32>
    %22 = vector.broadcast %c0_i32_6 : i32 to vector<16x64xi32>
    %23 = arith.select %20, %21, %22 : vector<16x64xi1>, vector<16x64xi32>
    %24 = arith.addi %18, %23 : vector<16x64xi32>
    %c48_i32 = arith.constant 48 : i32
    %25 = vector.broadcast %c48_i32 : i32 to vector<16x64xi32>
    %26 = arith.cmpi sge, %11, %25 : vector<16x64xi32>
    %c1_i32_7 = arith.constant 1 : i32
    %c0_i32_8 = arith.constant 0 : i32
    %27 = vector.broadcast %c1_i32_7 : i32 to vector<16x64xi32>
    %28 = vector.broadcast %c0_i32_8 : i32 to vector<16x64xi32>
    %29 = arith.select %26, %27, %28 : vector<16x64xi1>, vector<16x64xi32>
    %30 = arith.addi %24, %29 : vector<16x64xi32>
    %c16_i32_9 = arith.constant 16 : i32
    %31 = vector.broadcast %c16_i32_9 : i32 to vector<16x64xi32>
    %32 = arith.muli %31, %30 : vector<16x64xi32>
    %33 = arith.subi %11, %32 : vector<16x64xi32>
    %c0_i32_10 = arith.constant 0 : i32
    %34 = vector.broadcast %c0_i32_10 : i32 to vector<16x64xi32>
    %c8_i32 = arith.constant 8 : i32
    %35 = vector.broadcast %c8_i32 : i32 to vector<16x64xi32>
    %36 = arith.cmpi sge, %10, %35 : vector<16x64xi32>
    %c1_i32_11 = arith.constant 1 : i32
    %c0_i32_12 = arith.constant 0 : i32
    %37 = vector.broadcast %c1_i32_11 : i32 to vector<16x64xi32>
    %38 = vector.broadcast %c0_i32_12 : i32 to vector<16x64xi32>
    %39 = arith.select %36, %37, %38 : vector<16x64xi1>, vector<16x64xi32>
    %40 = arith.addi %34, %39 : vector<16x64xi32>
    %c0_i32_13 = arith.constant 0 : i32
    %41 = vector.broadcast %c0_i32_13 : i32 to vector<16x64xi32>
    %c8_i32_14 = arith.constant 8 : i32
    %42 = vector.broadcast %c8_i32_14 : i32 to vector<16x64xi32>
    %43 = arith.cmpi sge, %33, %42 : vector<16x64xi32>
    %c1_i32_15 = arith.constant 1 : i32
    %c0_i32_16 = arith.constant 0 : i32
    %44 = vector.broadcast %c1_i32_15 : i32 to vector<16x64xi32>
    %45 = vector.broadcast %c0_i32_16 : i32 to vector<16x64xi32>
    %46 = arith.select %43, %44, %45 : vector<16x64xi1>, vector<16x64xi32>
    %47 = arith.addi %41, %46 : vector<16x64xi32>
    %48 = arith.cmpi eq, %40, %47 : vector<16x64xi32>
    %49 = arith.cmpi sge, %10, %33 : vector<16x64xi32>
    %50 = arith.andi %48, %49 : vector<16x64xi1>
    %cst_17 = arith.constant 0.000000e+00 : f32
    %cst_18 = arith.constant 0xFF800000 : f32
    %51 = vector.broadcast %cst_17 : f32 to vector<16x64xf32>
    %52 = vector.broadcast %cst_18 : f32 to vector<16x64xf32>
    %53 = arith.select %50, %51, %52 : vector<16x64xi1>, vector<16x64xf32>
    %54 = tpu.iota {dimensions = array<i32: 0>} : vector<32x64xi32>
    %55 = tpu.iota {dimensions = array<i32: 1>} : vector<32x64xi32>
    %c0_i32_19 = arith.constant 0 : i32
    %56 = vector.broadcast %c0_i32_19 : i32 to vector<32x64xi32>
    %c8_i32_20 = arith.constant 8 : i32
    %57 = vector.broadcast %c8_i32_20 : i32 to vector<32x64xi32>
    %58 = arith.cmpi sge, %54, %57 : vector<32x64xi32>
    %c1_i32_21 = arith.constant 1 : i32
    %c0_i32_22 = arith.constant 0 : i32
    %59 = vector.broadcast %c1_i32_21 : i32 to vector<32x64xi32>
    %60 = vector.broadcast %c0_i32_22 : i32 to vector<32x64xi32>
    %61 = arith.select %58, %59, %60 : vector<32x64xi1>, vector<32x64xi32>
    %62 = arith.addi %56, %61 : vector<32x64xi32>
    %c16_i32_23 = arith.constant 16 : i32
    %63 = vector.broadcast %c16_i32_23 : i32 to vector<32x64xi32>
    %64 = arith.cmpi sge, %54, %63 : vector<32x64xi32>
    %c1_i32_24 = arith.constant 1 : i32
    %c0_i32_25 = arith.constant 0 : i32
    %65 = vector.broadcast %c1_i32_24 : i32 to vector<32x64xi32>
    %66 = vector.broadcast %c0_i32_25 : i32 to vector<32x64xi32>
    %67 = arith.select %64, %65, %66 : vector<32x64xi1>, vector<32x64xi32>
    %68 = arith.addi %62, %67 : vector<32x64xi32>
    %c24_i32 = arith.constant 24 : i32
    %69 = vector.broadcast %c24_i32 : i32 to vector<32x64xi32>
    %70 = arith.cmpi sge, %54, %69 : vector<32x64xi32>
    %c1_i32_26 = arith.constant 1 : i32
    %c0_i32_27 = arith.constant 0 : i32
    %71 = vector.broadcast %c1_i32_26 : i32 to vector<32x64xi32>
    %72 = vector.broadcast %c0_i32_27 : i32 to vector<32x64xi32>
    %73 = arith.select %70, %71, %72 : vector<32x64xi1>, vector<32x64xi32>
    %74 = arith.addi %68, %73 : vector<32x64xi32>
    %c0_i32_28 = arith.constant 0 : i32
    %75 = vector.broadcast %c0_i32_28 : i32 to vector<32x64xi32>
    %c16_i32_29 = arith.constant 16 : i32
    %76 = vector.broadcast %c16_i32_29 : i32 to vector<32x64xi32>
    %77 = arith.cmpi sge, %55, %76 : vector<32x64xi32>
    %c1_i32_30 = arith.constant 1 : i32
    %c0_i32_31 = arith.constant 0 : i32
    %78 = vector.broadcast %c1_i32_30 : i32 to vector<32x64xi32>
    %79 = vector.broadcast %c0_i32_31 : i32 to vector<32x64xi32>
    %80 = arith.select %77, %78, %79 : vector<32x64xi1>, vector<32x64xi32>
    %81 = arith.addi %75, %80 : vector<32x64xi32>
    %c32_i32_32 = arith.constant 32 : i32
    %82 = vector.broadcast %c32_i32_32 : i32 to vector<32x64xi32>
    %83 = arith.cmpi sge, %55, %82 : vector<32x64xi32>
    %c1_i32_33 = arith.constant 1 : i32
    %c0_i32_34 = arith.constant 0 : i32
    %84 = vector.broadcast %c1_i32_33 : i32 to vector<32x64xi32>
    %85 = vector.broadcast %c0_i32_34 : i32 to vector<32x64xi32>
    %86 = arith.select %83, %84, %85 : vector<32x64xi1>, vector<32x64xi32>
    %87 = arith.addi %81, %86 : vector<32x64xi32>
    %c48_i32_35 = arith.constant 48 : i32
    %88 = vector.broadcast %c48_i32_35 : i32 to vector<32x64xi32>
    %89 = arith.cmpi sge, %55, %88 : vector<32x64xi32>
    %c1_i32_36 = arith.constant 1 : i32
    %c0_i32_37 = arith.constant 0 : i32
    %90 = vector.broadcast %c1_i32_36 : i32 to vector<32x64xi32>
    %91 = vector.broadcast %c0_i32_37 : i32 to vector<32x64xi32>
    %92 = arith.select %89, %90, %91 : vector<32x64xi1>, vector<32x64xi32>
    %93 = arith.addi %87, %92 : vector<32x64xi32>
    %94 = arith.cmpi eq, %74, %93 : vector<32x64xi32>
    %95 = arith.extui %94 : vector<32x64xi1> to vector<32x64xi32>
    %96 = arith.sitofp %95 : vector<32x64xi32> to vector<32x64xf32>
    %97 = tpu.iota {dimensions = array<i32: 0>} : vector<64x32xi32>
    %98 = tpu.iota {dimensions = array<i32: 1>} : vector<64x32xi32>
    %c0_i32_38 = arith.constant 0 : i32
    %99 = vector.broadcast %c0_i32_38 : i32 to vector<64x32xi32>
    %c16_i32_39 = arith.constant 16 : i32
    %100 = vector.broadcast %c16_i32_39 : i32 to vector<64x32xi32>
    %101 = arith.cmpi sge, %97, %100 : vector<64x32xi32>
    %c1_i32_40 = arith.constant 1 : i32
    %c0_i32_41 = arith.constant 0 : i32
    %102 = vector.broadcast %c1_i32_40 : i32 to vector<64x32xi32>
    %103 = vector.broadcast %c0_i32_41 : i32 to vector<64x32xi32>
    %104 = arith.select %101, %102, %103 : vector<64x32xi1>, vector<64x32xi32>
    %105 = arith.addi %99, %104 : vector<64x32xi32>
    %c32_i32_42 = arith.constant 32 : i32
    %106 = vector.broadcast %c32_i32_42 : i32 to vector<64x32xi32>
    %107 = arith.cmpi sge, %97, %106 : vector<64x32xi32>
    %c1_i32_43 = arith.constant 1 : i32
    %c0_i32_44 = arith.constant 0 : i32
    %108 = vector.broadcast %c1_i32_43 : i32 to vector<64x32xi32>
    %109 = vector.broadcast %c0_i32_44 : i32 to vector<64x32xi32>
    %110 = arith.select %107, %108, %109 : vector<64x32xi1>, vector<64x32xi32>
    %111 = arith.addi %105, %110 : vector<64x32xi32>
    %c48_i32_45 = arith.constant 48 : i32
    %112 = vector.broadcast %c48_i32_45 : i32 to vector<64x32xi32>
    %113 = arith.cmpi sge, %97, %112 : vector<64x32xi32>
    %c1_i32_46 = arith.constant 1 : i32
    %c0_i32_47 = arith.constant 0 : i32
    %114 = vector.broadcast %c1_i32_46 : i32 to vector<64x32xi32>
    %115 = vector.broadcast %c0_i32_47 : i32 to vector<64x32xi32>
    %116 = arith.select %113, %114, %115 : vector<64x32xi1>, vector<64x32xi32>
    %117 = arith.addi %111, %116 : vector<64x32xi32>
    %c0_i32_48 = arith.constant 0 : i32
    %118 = vector.broadcast %c0_i32_48 : i32 to vector<64x32xi32>
    %c8_i32_49 = arith.constant 8 : i32
    %119 = vector.broadcast %c8_i32_49 : i32 to vector<64x32xi32>
    %120 = arith.cmpi sge, %98, %119 : vector<64x32xi32>
    %c1_i32_50 = arith.constant 1 : i32
    %c0_i32_51 = arith.constant 0 : i32
    %121 = vector.broadcast %c1_i32_50 : i32 to vector<64x32xi32>
    %122 = vector.broadcast %c0_i32_51 : i32 to vector<64x32xi32>
    %123 = arith.select %120, %121, %122 : vector<64x32xi1>, vector<64x32xi32>
    %124 = arith.addi %118, %123 : vector<64x32xi32>
    %c16_i32_52 = arith.constant 16 : i32
    %125 = vector.broadcast %c16_i32_52 : i32 to vector<64x32xi32>
    %126 = arith.cmpi sge, %98, %125 : vector<64x32xi32>
    %c1_i32_53 = arith.constant 1 : i32
    %c0_i32_54 = arith.constant 0 : i32
    %127 = vector.broadcast %c1_i32_53 : i32 to vector<64x32xi32>
    %128 = vector.broadcast %c0_i32_54 : i32 to vector<64x32xi32>
    %129 = arith.select %126, %127, %128 : vector<64x32xi1>, vector<64x32xi32>
    %130 = arith.addi %124, %129 : vector<64x32xi32>
    %c24_i32_55 = arith.constant 24 : i32
    %131 = vector.broadcast %c24_i32_55 : i32 to vector<64x32xi32>
    %132 = arith.cmpi sge, %98, %131 : vector<64x32xi32>
    %c1_i32_56 = arith.constant 1 : i32
    %c0_i32_57 = arith.constant 0 : i32
    %133 = vector.broadcast %c1_i32_56 : i32 to vector<64x32xi32>
    %134 = vector.broadcast %c0_i32_57 : i32 to vector<64x32xi32>
    %135 = arith.select %132, %133, %134 : vector<64x32xi1>, vector<64x32xi32>
    %136 = arith.addi %130, %135 : vector<64x32xi32>
    %137 = arith.cmpi eq, %117, %136 : vector<64x32xi32>
    %138 = arith.extui %137 : vector<64x32xi1> to vector<64x32xi32>
    %139 = arith.sitofp %138 : vector<64x32xi32> to vector<64x32xf32>
    %140 = arith.truncf %139 : vector<64x32xf32> to vector<64x32xbf16>
    %c0_58 = arith.constant 0 : index
    %c0_59 = arith.constant 0 : index
    %c0_60 = arith.constant 0 : index
    %141 = vector.load %arg2[%c0_58, %c0_59, %c0_60] : memref<2x6x32xf32, #tpu.memory_space<vmem>>, vector<1x6x32xf32>
    %142 = vector.shape_cast %141 : vector<1x6x32xf32> to vector<6x32xf32>
    %143 = vector.extract_strided_slice %142 {offsets = [0, 0], sizes = [1, 32], strides = [1, 1]} : vector<6x32xf32> to vector<1x32xf32>
    %144 = vector.extract_strided_slice %142 {offsets = [1, 0], sizes = [1, 32], strides = [1, 1]} : vector<6x32xf32> to vector<1x32xf32>
    %145 = vector.extract_strided_slice %142 {offsets = [2, 0], sizes = [1, 32], strides = [1, 1]} : vector<6x32xf32> to vector<1x32xf32>
    %146 = vector.extract_strided_slice %142 {offsets = [3, 0], sizes = [1, 32], strides = [1, 1]} : vector<6x32xf32> to vector<1x32xf32>
    %147 = vector.extract_strided_slice %142 {offsets = [4, 0], sizes = [1, 32], strides = [1, 1]} : vector<6x32xf32> to vector<1x32xf32>
    %148 = vector.extract_strided_slice %142 {offsets = [5, 0], sizes = [1, 32], strides = [1, 1]} : vector<6x32xf32> to vector<1x32xf32>
    %c0_61 = arith.constant 0 : index
    %c0_62 = arith.constant 0 : index
    %149 = vector.load %arg5[%c0_61, %c0_62] : memref<3x128xf32, #tpu.memory_space<vmem>>, vector<1x128xf32>
    %c0_63 = arith.constant 0 : index
    %c0_64 = arith.constant 0 : index
    %c0_65 = arith.constant 0 : index
    %150 = vector.load %arg3[%c0_63, %c0_64, %c0_65] : memref<2x32x256xbf16, #tpu.memory_space<vmem>>, vector<1x32x96xbf16>
    %151 = vector.shape_cast %150 : vector<1x32x96xbf16> to vector<32x96xbf16>
    %c0_66 = arith.constant 0 : index
    %c0_67 = arith.constant 0 : index
    %c96 = arith.constant 96 : index
    %152 = vector.load %arg3[%c0_66, %c0_67, %c96] : memref<2x32x256xbf16, #tpu.memory_space<vmem>>, vector<1x32x32xbf16>
    %153 = vector.shape_cast %152 : vector<1x32x32xbf16> to vector<32x32xbf16>
    %c0_68 = arith.constant 0 : index
    %c0_69 = arith.constant 0 : index
    %c128 = arith.constant 128 : index
    %154 = vector.load %arg3[%c0_68, %c0_69, %c128] : memref<2x32x256xbf16, #tpu.memory_space<vmem>>, vector<1x32x128xbf16>
    %155 = vector.shape_cast %154 : vector<1x32x128xbf16> to vector<32x128xbf16>
    %cst_70 = arith.constant dense<0.000000e+00> : vector<16xf32>
    %156 = vector.multi_reduction <add>, %9, %cst_70 [1] : vector<16x32xf32> to vector<16xf32>
    %157 = vector.shape_cast %156 : vector<16xf32> to vector<16x1xf32>
    %cst_71 = arith.constant 3.200000e+01 : f32
    %158 = vector.broadcast %cst_71 : f32 to vector<16x1xf32>
    %159 = arith.divf %157, %158 : vector<16x1xf32>
    %160 = vector.broadcast %159 : vector<16x1xf32> to vector<16x32xf32>
    %161 = arith.subf %9, %160 : vector<16x32xf32>
    %162 = arith.mulf %161, %161 : vector<16x32xf32>
    %cst_72 = arith.constant dense<0.000000e+00> : vector<16xf32>
    %163 = vector.multi_reduction <add>, %162, %cst_72 [1] : vector<16x32xf32> to vector<16xf32>
    %164 = vector.shape_cast %163 : vector<16xf32> to vector<16x1xf32>
    %cst_73 = arith.constant 3.200000e+01 : f32
    %165 = vector.broadcast %cst_73 : f32 to vector<16x1xf32>
    %166 = arith.divf %164, %165 : vector<16x1xf32>
    %167 = vector.broadcast %159 : vector<16x1xf32> to vector<16x32xf32>
    %168 = arith.subf %9, %167 : vector<16x32xf32>
    %cst_74 = arith.constant 9.99999974E-6 : f32
    %169 = vector.broadcast %cst_74 : f32 to vector<16x1xf32>
    %170 = arith.addf %166, %169 : vector<16x1xf32>
    %171 = math.rsqrt %170 : vector<16x1xf32>
    %172 = vector.broadcast %171 : vector<16x1xf32> to vector<16x32xf32>
    %173 = arith.mulf %168, %172 : vector<16x32xf32>
    %174 = vector.broadcast %143 : vector<1x32xf32> to vector<16x32xf32>
    %175 = arith.mulf %173, %174 : vector<16x32xf32>
    %176 = vector.broadcast %144 : vector<1x32xf32> to vector<16x32xf32>
    %177 = arith.addf %175, %176 : vector<16x32xf32>
    %178 = arith.truncf %177 : vector<16x32xf32> to vector<16x32xbf16>
    %cst_75 = arith.constant dense<0.000000e+00> : vector<16x96xf32>
    %179 = tpu.matmul %178, %151, %cst_75 {dimension_numbers = #tpu.dot_dimension_numbers<[1], [0], [0], [1], [0, 0, 1, 1], [], []>} : vector<16x32xbf16>, vector<32x96xbf16>, vector<16x96xf32> -> vector<16x96xf32>
    %180 = vector.extract_strided_slice %179 {offsets = [0, 0], sizes = [16, 32], strides = [1, 1]} : vector<16x96xf32> to vector<16x32xf32>
    %181 = vector.extract_strided_slice %179 {offsets = [0, 32], sizes = [16, 32], strides = [1, 1]} : vector<16x96xf32> to vector<16x32xf32>
    %182 = vector.extract_strided_slice %179 {offsets = [0, 64], sizes = [16, 32], strides = [1, 1]} : vector<16x96xf32> to vector<16x32xf32>
    %183 = tpu.transpose %181, [1, 0] : vector<16x32xf32> -> vector<32x16xf32>
    %184 = tpu.concatenate %183, %183, %183, %183 in 1 : vector<32x16xf32>, vector<32x16xf32>, vector<32x16xf32>, vector<32x16xf32> -> vector<32x64xf32>
    %185 = arith.mulf %184, %96 : vector<32x64xf32>
    %186 = tpu.concatenate %182, %182, %182, %182 in 0 : vector<16x32xf32>, vector<16x32xf32>, vector<16x32xf32>, vector<16x32xf32> -> vector<64x32xf32>
    %187 = arith.mulf %186, %139 : vector<64x32xf32>
    %188 = arith.truncf %180 : vector<16x32xf32> to vector<16x32xbf16>
    %189 = arith.truncf %185 : vector<32x64xf32> to vector<32x64xbf16>
    %cst_76 = arith.constant dense<0.000000e+00> : vector<16x64xf32>
    %190 = tpu.matmul %188, %189, %cst_76 {dimension_numbers = #tpu.dot_dimension_numbers<[1], [0], [0], [1], [0, 0, 1, 1], [], []>} : vector<16x32xbf16>, vector<32x64xbf16>, vector<16x64xf32> -> vector<16x64xf32>
    %191 = arith.addf %190, %53 : vector<16x64xf32>
    %cst_77 = arith.constant dense<0xFF800000> : vector<16xf32>
    %192 = vector.multi_reduction <maximumf>, %191, %cst_77 [1] : vector<16x64xf32> to vector<16xf32>
    %193 = vector.shape_cast %192 : vector<16xf32> to vector<16x1xf32>
    %194 = vector.broadcast %193 : vector<16x1xf32> to vector<16x64xf32>
    %195 = arith.subf %191, %194 : vector<16x64xf32>
    %196 = math.exp %195 : vector<16x64xf32>
    %197 = arith.truncf %196 : vector<16x64xf32> to vector<16x64xbf16>
    %198 = arith.truncf %187 : vector<64x32xf32> to vector<64x32xbf16>
    %cst_78 = arith.constant dense<0.000000e+00> : vector<16x32xf32>
    %199 = tpu.matmul %197, %198, %cst_78 {dimension_numbers = #tpu.dot_dimension_numbers<[1], [0], [0], [1], [0, 0, 1, 1], [], []>} : vector<16x64xbf16>, vector<64x32xbf16>, vector<16x32xf32> -> vector<16x32xf32>
    %200 = arith.truncf %196 : vector<16x64xf32> to vector<16x64xbf16>
    %cst_79 = arith.constant dense<0.000000e+00> : vector<16x32xf32>
    %201 = tpu.matmul %200, %140, %cst_79 {dimension_numbers = #tpu.dot_dimension_numbers<[1], [0], [0], [1], [0, 0, 1, 1], [], []>} : vector<16x64xbf16>, vector<64x32xbf16>, vector<16x32xf32> -> vector<16x32xf32>
    %202 = tpu.reciprocal %201 : vector<16x32xf32> -> vector<16x32xf32>
    %203 = arith.mulf %199, %202 : vector<16x32xf32>
    %204 = arith.truncf %203 : vector<16x32xf32> to vector<16x32xbf16>
    %cst_80 = arith.constant dense<0.000000e+00> : vector<16x32xf32>
    %205 = tpu.matmul %204, %153, %cst_80 {dimension_numbers = #tpu.dot_dimension_numbers<[1], [0], [0], [1], [0, 0, 1, 1], [], []>} : vector<16x32xbf16>, vector<32x32xbf16>, vector<16x32xf32> -> vector<16x32xf32>
    %206 = vector.broadcast %145 : vector<1x32xf32> to vector<16x32xf32>
    %207 = arith.addf %205, %206 : vector<16x32xf32>
    %208 = arith.addf %9, %207 : vector<16x32xf32>
    %cst_81 = arith.constant dense<0.000000e+00> : vector<16xf32>
    %209 = vector.multi_reduction <add>, %208, %cst_81 [1] : vector<16x32xf32> to vector<16xf32>
    %210 = vector.shape_cast %209 : vector<16xf32> to vector<16x1xf32>
    %cst_82 = arith.constant 3.200000e+01 : f32
    %211 = vector.broadcast %cst_82 : f32 to vector<16x1xf32>
    %212 = arith.divf %210, %211 : vector<16x1xf32>
    %213 = vector.broadcast %212 : vector<16x1xf32> to vector<16x32xf32>
    %214 = arith.subf %208, %213 : vector<16x32xf32>
    %215 = arith.mulf %214, %214 : vector<16x32xf32>
    %cst_83 = arith.constant dense<0.000000e+00> : vector<16xf32>
    %216 = vector.multi_reduction <add>, %215, %cst_83 [1] : vector<16x32xf32> to vector<16xf32>
    %217 = vector.shape_cast %216 : vector<16xf32> to vector<16x1xf32>
    %cst_84 = arith.constant 3.200000e+01 : f32
    %218 = vector.broadcast %cst_84 : f32 to vector<16x1xf32>
    %219 = arith.divf %217, %218 : vector<16x1xf32>
    %220 = vector.broadcast %212 : vector<16x1xf32> to vector<16x32xf32>
    %221 = arith.subf %208, %220 : vector<16x32xf32>
    %cst_85 = arith.constant 9.99999974E-6 : f32
    %222 = vector.broadcast %cst_85 : f32 to vector<16x1xf32>
    %223 = arith.addf %219, %222 : vector<16x1xf32>
    %224 = math.rsqrt %223 : vector<16x1xf32>
    %225 = vector.broadcast %224 : vector<16x1xf32> to vector<16x32xf32>
    %226 = arith.mulf %221, %225 : vector<16x32xf32>
    %227 = vector.broadcast %146 : vector<1x32xf32> to vector<16x32xf32>
    %228 = arith.mulf %226, %227 : vector<16x32xf32>
    %229 = vector.broadcast %147 : vector<1x32xf32> to vector<16x32xf32>
    %230 = arith.addf %228, %229 : vector<16x32xf32>
    %231 = arith.truncf %230 : vector<16x32xf32> to vector<16x32xbf16>
    %cst_86 = arith.constant dense<0.000000e+00> : vector<16x128xf32>
    %232 = tpu.matmul %231, %155, %cst_86 {dimension_numbers = #tpu.dot_dimension_numbers<[1], [0], [0], [1], [0, 0, 1, 1], [], []>} : vector<16x32xbf16>, vector<32x128xbf16>, vector<16x128xf32> -> vector<16x128xf32>
    %233 = vector.broadcast %149 : vector<1x128xf32> to vector<16x128xf32>
    %234 = arith.addf %232, %233 : vector<16x128xf32>
    %cst_87 = arith.constant 0.000000e+00 : f32
    %235 = vector.broadcast %cst_87 : f32 to vector<16x128xf32>
    %236 = arith.maximumf %234, %235 : vector<16x128xf32>
    %237 = arith.truncf %236 : vector<16x128xf32> to vector<16x128xbf16>
    %c0_88 = arith.constant 0 : index
    %c0_89 = arith.constant 0 : index
    %c0_90 = arith.constant 0 : index
    %238 = vector.load %arg4[%c0_88, %c0_89, %c0_90] : memref<2x128x32xbf16, #tpu.memory_space<vmem>>, vector<1x128x32xbf16>
    %239 = vector.shape_cast %238 : vector<1x128x32xbf16> to vector<128x32xbf16>
    %cst_91 = arith.constant dense<0.000000e+00> : vector<16x32xf32>
    %240 = tpu.matmul %237, %239, %cst_91 {dimension_numbers = #tpu.dot_dimension_numbers<[1], [0], [0], [1], [0, 0, 1, 1], [], []>} : vector<16x128xbf16>, vector<128x32xbf16>, vector<16x32xf32> -> vector<16x32xf32>
    %241 = vector.broadcast %148 : vector<1x32xf32> to vector<16x32xf32>
    %242 = arith.addf %240, %241 : vector<16x32xf32>
    %243 = arith.addf %208, %242 : vector<16x32xf32>
    %c1 = arith.constant 1 : index
    %c0_92 = arith.constant 0 : index
    %c0_93 = arith.constant 0 : index
    %244 = vector.load %arg2[%c1, %c0_92, %c0_93] : memref<2x6x32xf32, #tpu.memory_space<vmem>>, vector<1x6x32xf32>
    %245 = vector.shape_cast %244 : vector<1x6x32xf32> to vector<6x32xf32>
    %246 = vector.extract_strided_slice %245 {offsets = [0, 0], sizes = [1, 32], strides = [1, 1]} : vector<6x32xf32> to vector<1x32xf32>
    %247 = vector.extract_strided_slice %245 {offsets = [1, 0], sizes = [1, 32], strides = [1, 1]} : vector<6x32xf32> to vector<1x32xf32>
    %248 = vector.extract_strided_slice %245 {offsets = [2, 0], sizes = [1, 32], strides = [1, 1]} : vector<6x32xf32> to vector<1x32xf32>
    %249 = vector.extract_strided_slice %245 {offsets = [3, 0], sizes = [1, 32], strides = [1, 1]} : vector<6x32xf32> to vector<1x32xf32>
    %250 = vector.extract_strided_slice %245 {offsets = [4, 0], sizes = [1, 32], strides = [1, 1]} : vector<6x32xf32> to vector<1x32xf32>
    %251 = vector.extract_strided_slice %245 {offsets = [5, 0], sizes = [1, 32], strides = [1, 1]} : vector<6x32xf32> to vector<1x32xf32>
    %c1_94 = arith.constant 1 : index
    %c0_95 = arith.constant 0 : index
    %252 = vector.load %arg5[%c1_94, %c0_95] : memref<3x128xf32, #tpu.memory_space<vmem>>, vector<1x128xf32>
    %c1_96 = arith.constant 1 : index
    %c0_97 = arith.constant 0 : index
    %c0_98 = arith.constant 0 : index
    %253 = vector.load %arg3[%c1_96, %c0_97, %c0_98] : memref<2x32x256xbf16, #tpu.memory_space<vmem>>, vector<1x32x96xbf16>
    %254 = vector.shape_cast %253 : vector<1x32x96xbf16> to vector<32x96xbf16>
    %c1_99 = arith.constant 1 : index
    %c0_100 = arith.constant 0 : index
    %c96_101 = arith.constant 96 : index
    %255 = vector.load %arg3[%c1_99, %c0_100, %c96_101] : memref<2x32x256xbf16, #tpu.memory_space<vmem>>, vector<1x32x32xbf16>
    %256 = vector.shape_cast %255 : vector<1x32x32xbf16> to vector<32x32xbf16>
    %c1_102 = arith.constant 1 : index
    %c0_103 = arith.constant 0 : index
    %c128_104 = arith.constant 128 : index
    %257 = vector.load %arg3[%c1_102, %c0_103, %c128_104] : memref<2x32x256xbf16, #tpu.memory_space<vmem>>, vector<1x32x128xbf16>
    %258 = vector.shape_cast %257 : vector<1x32x128xbf16> to vector<32x128xbf16>
    %cst_105 = arith.constant dense<0.000000e+00> : vector<16xf32>
    %259 = vector.multi_reduction <add>, %243, %cst_105 [1] : vector<16x32xf32> to vector<16xf32>
    %260 = vector.shape_cast %259 : vector<16xf32> to vector<16x1xf32>
    %cst_106 = arith.constant 3.200000e+01 : f32
    %261 = vector.broadcast %cst_106 : f32 to vector<16x1xf32>
    %262 = arith.divf %260, %261 : vector<16x1xf32>
    %263 = vector.broadcast %262 : vector<16x1xf32> to vector<16x32xf32>
    %264 = arith.subf %243, %263 : vector<16x32xf32>
    %265 = arith.mulf %264, %264 : vector<16x32xf32>
    %cst_107 = arith.constant dense<0.000000e+00> : vector<16xf32>
    %266 = vector.multi_reduction <add>, %265, %cst_107 [1] : vector<16x32xf32> to vector<16xf32>
    %267 = vector.shape_cast %266 : vector<16xf32> to vector<16x1xf32>
    %cst_108 = arith.constant 3.200000e+01 : f32
    %268 = vector.broadcast %cst_108 : f32 to vector<16x1xf32>
    %269 = arith.divf %267, %268 : vector<16x1xf32>
    %270 = vector.broadcast %262 : vector<16x1xf32> to vector<16x32xf32>
    %271 = arith.subf %243, %270 : vector<16x32xf32>
    %cst_109 = arith.constant 9.99999974E-6 : f32
    %272 = vector.broadcast %cst_109 : f32 to vector<16x1xf32>
    %273 = arith.addf %269, %272 : vector<16x1xf32>
    %274 = math.rsqrt %273 : vector<16x1xf32>
    %275 = vector.broadcast %274 : vector<16x1xf32> to vector<16x32xf32>
    %276 = arith.mulf %271, %275 : vector<16x32xf32>
    %277 = vector.broadcast %246 : vector<1x32xf32> to vector<16x32xf32>
    %278 = arith.mulf %276, %277 : vector<16x32xf32>
    %279 = vector.broadcast %247 : vector<1x32xf32> to vector<16x32xf32>
    %280 = arith.addf %278, %279 : vector<16x32xf32>
    %281 = arith.truncf %280 : vector<16x32xf32> to vector<16x32xbf16>
    %cst_110 = arith.constant dense<0.000000e+00> : vector<16x96xf32>
    %282 = tpu.matmul %281, %254, %cst_110 {dimension_numbers = #tpu.dot_dimension_numbers<[1], [0], [0], [1], [0, 0, 1, 1], [], []>} : vector<16x32xbf16>, vector<32x96xbf16>, vector<16x96xf32> -> vector<16x96xf32>
    %283 = vector.extract_strided_slice %282 {offsets = [0, 0], sizes = [16, 32], strides = [1, 1]} : vector<16x96xf32> to vector<16x32xf32>
    %284 = vector.extract_strided_slice %282 {offsets = [0, 32], sizes = [16, 32], strides = [1, 1]} : vector<16x96xf32> to vector<16x32xf32>
    %285 = vector.extract_strided_slice %282 {offsets = [0, 64], sizes = [16, 32], strides = [1, 1]} : vector<16x96xf32> to vector<16x32xf32>
    %286 = tpu.transpose %284, [1, 0] : vector<16x32xf32> -> vector<32x16xf32>
    %287 = tpu.concatenate %286, %286, %286, %286 in 1 : vector<32x16xf32>, vector<32x16xf32>, vector<32x16xf32>, vector<32x16xf32> -> vector<32x64xf32>
    %288 = arith.mulf %287, %96 : vector<32x64xf32>
    %289 = tpu.concatenate %285, %285, %285, %285 in 0 : vector<16x32xf32>, vector<16x32xf32>, vector<16x32xf32>, vector<16x32xf32> -> vector<64x32xf32>
    %290 = arith.mulf %289, %139 : vector<64x32xf32>
    %291 = arith.truncf %283 : vector<16x32xf32> to vector<16x32xbf16>
    %292 = arith.truncf %288 : vector<32x64xf32> to vector<32x64xbf16>
    %cst_111 = arith.constant dense<0.000000e+00> : vector<16x64xf32>
    %293 = tpu.matmul %291, %292, %cst_111 {dimension_numbers = #tpu.dot_dimension_numbers<[1], [0], [0], [1], [0, 0, 1, 1], [], []>} : vector<16x32xbf16>, vector<32x64xbf16>, vector<16x64xf32> -> vector<16x64xf32>
    %294 = arith.addf %293, %53 : vector<16x64xf32>
    %cst_112 = arith.constant dense<0xFF800000> : vector<16xf32>
    %295 = vector.multi_reduction <maximumf>, %294, %cst_112 [1] : vector<16x64xf32> to vector<16xf32>
    %296 = vector.shape_cast %295 : vector<16xf32> to vector<16x1xf32>
    %297 = vector.broadcast %296 : vector<16x1xf32> to vector<16x64xf32>
    %298 = arith.subf %294, %297 : vector<16x64xf32>
    %299 = math.exp %298 : vector<16x64xf32>
    %300 = arith.truncf %299 : vector<16x64xf32> to vector<16x64xbf16>
    %301 = arith.truncf %290 : vector<64x32xf32> to vector<64x32xbf16>
    %cst_113 = arith.constant dense<0.000000e+00> : vector<16x32xf32>
    %302 = tpu.matmul %300, %301, %cst_113 {dimension_numbers = #tpu.dot_dimension_numbers<[1], [0], [0], [1], [0, 0, 1, 1], [], []>} : vector<16x64xbf16>, vector<64x32xbf16>, vector<16x32xf32> -> vector<16x32xf32>
    %303 = arith.truncf %299 : vector<16x64xf32> to vector<16x64xbf16>
    %cst_114 = arith.constant dense<0.000000e+00> : vector<16x32xf32>
    %304 = tpu.matmul %303, %140, %cst_114 {dimension_numbers = #tpu.dot_dimension_numbers<[1], [0], [0], [1], [0, 0, 1, 1], [], []>} : vector<16x64xbf16>, vector<64x32xbf16>, vector<16x32xf32> -> vector<16x32xf32>
    %305 = tpu.reciprocal %304 : vector<16x32xf32> -> vector<16x32xf32>
    %306 = arith.mulf %302, %305 : vector<16x32xf32>
    %307 = arith.truncf %306 : vector<16x32xf32> to vector<16x32xbf16>
    %cst_115 = arith.constant dense<0.000000e+00> : vector<16x32xf32>
    %308 = tpu.matmul %307, %256, %cst_115 {dimension_numbers = #tpu.dot_dimension_numbers<[1], [0], [0], [1], [0, 0, 1, 1], [], []>} : vector<16x32xbf16>, vector<32x32xbf16>, vector<16x32xf32> -> vector<16x32xf32>
    %309 = vector.broadcast %248 : vector<1x32xf32> to vector<16x32xf32>
    %310 = arith.addf %308, %309 : vector<16x32xf32>
    %311 = arith.addf %243, %310 : vector<16x32xf32>
    %cst_116 = arith.constant dense<0.000000e+00> : vector<16xf32>
    %312 = vector.multi_reduction <add>, %311, %cst_116 [1] : vector<16x32xf32> to vector<16xf32>
    %313 = vector.shape_cast %312 : vector<16xf32> to vector<16x1xf32>
    %cst_117 = arith.constant 3.200000e+01 : f32
    %314 = vector.broadcast %cst_117 : f32 to vector<16x1xf32>
    %315 = arith.divf %313, %314 : vector<16x1xf32>
    %316 = vector.broadcast %315 : vector<16x1xf32> to vector<16x32xf32>
    %317 = arith.subf %311, %316 : vector<16x32xf32>
    %318 = arith.mulf %317, %317 : vector<16x32xf32>
    %cst_118 = arith.constant dense<0.000000e+00> : vector<16xf32>
    %319 = vector.multi_reduction <add>, %318, %cst_118 [1] : vector<16x32xf32> to vector<16xf32>
    %320 = vector.shape_cast %319 : vector<16xf32> to vector<16x1xf32>
    %cst_119 = arith.constant 3.200000e+01 : f32
    %321 = vector.broadcast %cst_119 : f32 to vector<16x1xf32>
    %322 = arith.divf %320, %321 : vector<16x1xf32>
    %323 = vector.broadcast %315 : vector<16x1xf32> to vector<16x32xf32>
    %324 = arith.subf %311, %323 : vector<16x32xf32>
    %cst_120 = arith.constant 9.99999974E-6 : f32
    %325 = vector.broadcast %cst_120 : f32 to vector<16x1xf32>
    %326 = arith.addf %322, %325 : vector<16x1xf32>
    %327 = math.rsqrt %326 : vector<16x1xf32>
    %328 = vector.broadcast %327 : vector<16x1xf32> to vector<16x32xf32>
    %329 = arith.mulf %324, %328 : vector<16x32xf32>
    %330 = vector.broadcast %249 : vector<1x32xf32> to vector<16x32xf32>
    %331 = arith.mulf %329, %330 : vector<16x32xf32>
    %332 = vector.broadcast %250 : vector<1x32xf32> to vector<16x32xf32>
    %333 = arith.addf %331, %332 : vector<16x32xf32>
    %334 = arith.truncf %333 : vector<16x32xf32> to vector<16x32xbf16>
    %cst_121 = arith.constant dense<0.000000e+00> : vector<16x128xf32>
    %335 = tpu.matmul %334, %258, %cst_121 {dimension_numbers = #tpu.dot_dimension_numbers<[1], [0], [0], [1], [0, 0, 1, 1], [], []>} : vector<16x32xbf16>, vector<32x128xbf16>, vector<16x128xf32> -> vector<16x128xf32>
    %336 = vector.broadcast %252 : vector<1x128xf32> to vector<16x128xf32>
    %337 = arith.addf %335, %336 : vector<16x128xf32>
    %cst_122 = arith.constant 0.000000e+00 : f32
    %338 = vector.broadcast %cst_122 : f32 to vector<16x128xf32>
    %339 = arith.maximumf %337, %338 : vector<16x128xf32>
    %340 = arith.truncf %339 : vector<16x128xf32> to vector<16x128xbf16>
    %c1_123 = arith.constant 1 : index
    %c0_124 = arith.constant 0 : index
    %c0_125 = arith.constant 0 : index
    %341 = vector.load %arg4[%c1_123, %c0_124, %c0_125] : memref<2x128x32xbf16, #tpu.memory_space<vmem>>, vector<1x128x32xbf16>
    %342 = vector.shape_cast %341 : vector<1x128x32xbf16> to vector<128x32xbf16>
    %cst_126 = arith.constant dense<0.000000e+00> : vector<16x32xf32>
    %343 = tpu.matmul %340, %342, %cst_126 {dimension_numbers = #tpu.dot_dimension_numbers<[1], [0], [0], [1], [0, 0, 1, 1], [], []>} : vector<16x128xbf16>, vector<128x32xbf16>, vector<16x32xf32> -> vector<16x32xf32>
    %344 = vector.broadcast %251 : vector<1x32xf32> to vector<16x32xf32>
    %345 = arith.addf %343, %344 : vector<16x32xf32>
    %346 = arith.addf %311, %345 : vector<16x32xf32>
    %c2 = arith.constant 2 : index
    %c0_127 = arith.constant 0 : index
    %347 = vector.load %arg5[%c2, %c0_127] : memref<3x128xf32, #tpu.memory_space<vmem>>, vector<1x128xf32>
    %348 = arith.truncf %346 : vector<16x32xf32> to vector<16x32xbf16>
    %c0_128 = arith.constant 0 : index
    %c0_129 = arith.constant 0 : index
    %349 = vector.load %arg6[%c0_128, %c0_129] : memref<32x128xbf16, #tpu.memory_space<vmem>>, vector<32x128xbf16>
    %cst_130 = arith.constant dense<0.000000e+00> : vector<16x128xf32>
    %350 = tpu.matmul %348, %349, %cst_130 {dimension_numbers = #tpu.dot_dimension_numbers<[1], [0], [0], [1], [0, 0, 1, 1], [], []>} : vector<16x32xbf16>, vector<32x128xbf16>, vector<16x128xf32> -> vector<16x128xf32>
    %351 = vector.broadcast %347 : vector<1x128xf32> to vector<16x128xf32>
    %352 = arith.addf %350, %351 : vector<16x128xf32>
    %c0_131 = arith.constant 0 : index
    %c0_132 = arith.constant 0 : index
    %353 = vector.load %arg7[%c0_131, %c0_132] : memref<16x128xf32, #tpu.memory_space<vmem>>, vector<16x128xf32>
    tpu.vector_store %arg7[%c0_131, %c0_132], %352 {strides = array<i32>} : memref<16x128xf32, #tpu.memory_space<vmem>>, vector<16x128xf32>,
    return
  }
}

</mosaic_0001>

<bundles_post_ra>
// kernel: tpu_custom_call.1
= control target key start
LH: loop header
LB: loop body
LE: loop exit
PB: predicated region body
PF: predicated region fallthrough
CT: control target
= control target key end

     0   :  { %v2261_v2 = vmov 0   ;;  %s3022_s0 = inlined_call_operand.vmem [shape: s32[16,1], index: 0, kind: input, shape index: {}]   ;;  %s3023_s1 = inlined_call_operand.vmem [shape: f32[144,32], index: 1, kind: input, shape index: {}]   ;;  %s3024_s2 = inlined_call_operand.vmem [shape: f32[2,6,32], index: 2, kind: input, shape index: {}]   ;;  %s3025_s3 = inlined_call_operand.vmem [shape: bf16[2,32,256], index: 3, kind: input, shape index: {}]   ;;  %s3026_s4 = inlined_call_operand.vmem [shape: bf16[2,128,32], index: 4, kind: input, shape index: {}]   ;;  %s3027_s5 = inlined_call_operand.vmem [shape: f32[3,128], index: 5, kind: input, shape index: {}]   ;;  %s3028_s6 = inlined_call_operand.vmem [shape: bf16[32,128], index: 6, kind: input, shape index: {}]   ;;  %s3029_s7 = inlined_call_operand.hbm [shape: f32[16,128], index: 7, kind: output, shape index: {}]  }
   0x1   :  { %v28_v0 = vld [vmem:[%s3022_s0] sm:$0xff]  ;;  %v44_v1 = vld [vmem:[%s3023_s1 + $0x10] sm:$0xff]  ;;  %2158 = vset.pattern.permute.xlu0 %v2261_v2  ;;  %v45_v3 = vld [vmem:[%s3023_s1 + $0x18] sm:$0xff] }
   0x2   :  { %v46_v4 = vld [vmem:[%s3023_s1 + $0x20] sm:$0xff]  ;;  %v47_v5 = vld [vmem:[%s3023_s1 + $0x28] sm:$0xff]  ;;  %33 = vperm.xlu0 %2158, %v28_v0   ;;  %v2112_v6 = vpack.c.bf16 %v45_v3, %v44_v1  ;;  %v48_v9 = vld [vmem:[%s3023_s1 + $0x30] sm:$0xff] }
   0x3   :  { %v2116_v7 = vpack.c.bf16 %v47_v5, %v46_v4  ;;  %v29_v8 = vld [vmem:[%s3022_s0 + $0x8] sm:$0xff]  ;;  %v49_v10 = vld [vmem:[%s3023_s1 + $0x38] sm:$0xff]  ;;  %v50_v11 = vld [vmem:[%s3023_s1 + $0x40] sm:$0xff] }
   0x4   :  { %2113 = vmatprep.subr.bf16.mxu0 %v2112_v6  ;;  %v2120_v12 = vpack.c.bf16 %v49_v10, %v48_v9  ;;  %v51_v13 = vld [vmem:[%s3023_s1 + $0x48] sm:$0xff]  ;;  %v52_v14 = vld [vmem:[%s3023_s1 + $0x50] sm:$0xff]  ;;  %v53_v15 = vld [vmem:[%s3023_s1 + $0x58] sm:$0xff] }
   0x5   :  { %2115 = vmatpush3.bf16.msra.mxu0 %v2112_v6  ;;  %v2124_v16 = vpack.c.bf16 %v51_v13, %v50_v11  ;;  %v54_v17 = vld [vmem:[%s3023_s1 + $0x60] sm:$0xff]  ;;  %v55_v18 = vld [vmem:[%s3023_s1 + $0x68] sm:$0xff]  ;;  %v2128_v19 = vpack.c.bf16 %v53_v15, %v52_v14  ;;  %v56_v20 = vld [vmem:[%s3023_s1 + $0x70] sm:$0xff] }
   0x6   :  { %36 = vperm.xlu0 %2158, %v29_v8   ;;  %2117 = vmatprep.subr.bf16.mxu0 %v2116_v7  ;;  %v57_v21 = vld [vmem:[%s3023_s1 + $0x78] sm:$0xff]  ;;  %v2132_v22 = vpack.c.bf16 %v55_v18, %v54_v17  ;;  %v58_v23 = vld [vmem:[%s3023_s1 + $0x80] sm:$0xff]  ;;  %v59_v24 = vld [vmem:[%s3023_s1 + $0x88] sm:$0xff] }
   0x7   :  { %v2136_v25 = vpack.c.bf16 %v57_v21, %v56_v20 }
   0x9   :  { %2119 = vmatpush3.bf16.msra.mxu0 %v2116_v7 }
   0xa   :  { %2121 = vmatprep.subr.bf16.mxu0 %v2120_v12 }
   0xd   :  { %2123 = vmatpush3.bf16.msra.mxu0 %v2120_v12 }
   0xe   :  { %2125 = vmatprep.subr.bf16.mxu0 %v2124_v16 }
  0x11   :  { %2127 = vmatpush3.bf16.msra.mxu0 %v2124_v16 }
  0x12   :  { %2129 = vmatprep.subr.bf16.mxu0 %v2128_v19 }
  0x15   :  { %2131 = vmatpush3.bf16.msra.mxu0 %v2128_v19 }
  0x16   :  { %2133 = vmatprep.subr.bf16.mxu0 %v2132_v22 }
  0x17   :  { %12 = vsyncpa [#allocation3], 0  ;;  %v2140_v26 = vpack.c.bf16 %v59_v24, %v58_v23  ;;  %v30_v27 = vlaneseq  ;;  %v2262_v30 = vmov 1.0   ;;  %v60_v32 = vld [vmem:[%s3023_s1] sm:$0xff]  ;;  %v61_v34 = vld [vmem:[%s3023_s1 + $0x8] sm:$0xff]  ;;  %vm310_vm2 = vcmask 261120  }
  0x18   :  { %v2395_v50 = vld [vmem:[%s3025_s3] ss:$8 sps:$4 sm:$0xff]   ;;  %v2263_v51 = vmov 0.0   ;;  %v2403_v52 = vld [vmem:[%s3025_s3 + $0x10] ss:$8 sps:$4 sm:$0xff]   ;;  %vm2264_vm3 = vmmov 0  }
  0x19   :  { %2135 = vmatpush3.bf16.msra.mxu0 %v2132_v22  ;;  %v2370_v28 = vand.u32 127, %v30_v27  ;;  %1952 = vmatprep.subr.bf16.mxu1 %v2263_v51  ;;  %v2412_v59 = vshrl.u32 %v30_v27, 7  ;;  %v2418_v61 = vld [vmem:[%s3024_s2] sm:$0x3f]  ;;  %s2265_s21 = smov 96   ;;  %s2266_s22 = smov 16  }
  0x1a   :  { %2137 = vmatprep.subr.bf16.mxu0 %v2136_v25  ;;  %1953 = vmatpush3.bf16.msra.mxu1 %v2395_v50  ;;  %s2267_s23 = smov 32   ;;  %s2268_s24 = smov 48   ;;  %vm487_vm13 = vcmask 130048   ;;  %vm496_vm15 = vcmask 392192  }
  0x1b   :  { %1956 = vmatprep.mubr.msk.bf16.mxu1 %vm2264_vm3, %v2263_v51  ;;  %1954 = vmatprep.subr.bf16.mxu1 %v2263_v51  ;;  %v340_v60 = vsub.s32 0, %v2412_v59  ;;  %v346_v1 = vsub.s32 1, %v2412_v59  ;;  %vm140_vm4 = vcmp.ge.s32.totalorder %v2370_v28, 16  ;;  %vm266_vm5 = vcmp.ge.s32.totalorder %v2370_v28, 8  ;;  %s2269_s25 = smov 64   ;;  %s2272_s10 = smov [#allocation2]  }
  0x1c   :  { %v141_v21 = vsel %vm140_vm4, 1, %v2261_v2  ;;  %v267_v22 = vsel %vm266_vm5, 1, %v2261_v2  ;;  %vm269_vm6 = vcmp.ge.s32.totalorder %v2370_v28, 24  ;;  %vm142_vm11 = vcmp.ge.s32.totalorder %v2370_v28, 32 }
  0x1d   :  { %2139 = vmatpush3.bf16.msra.mxu0 %v2136_v25  ;;  %v341_v0 = vrot.slane %v2418_v61, %v340_v60  ;;  %v347_v6 = vrot.slane %v2418_v61, %v346_v1  ;;  %v268_v23 = vadd.s32 %v267_v22, %v141_v21  ;;  %v270_v24 = vsel %vm269_vm6, 1, %v2261_v2 }
  0x1e   :  { %2141 = vmatprep.subr.bf16.mxu0 %v2140_v26  ;;  %1955 = vmatpush3.bf16.msra.mxu1 %v2403_v52  ;;  %vm145_vm12 = vcmp.ge.s32.totalorder %v2370_v28, 48 }
  0x1f   :  { %1960 = vmatprep.subr.bf16.mxu1 %v2263_v51 }
  0x21   :  { %2143 = vmatpush3.bf16.msra.mxu0 %v2140_v26  ;;  %v2462_v26 = vadd.s32 %v270_v24, %v268_v23 }
  0x22   :  { %2008 = vmatprep.subr.bf16.mxu0 %v2263_v51 }
  0x23   :  { %vm1734_vm7 = vcmp.eq.s32.totalorder %v2462_v26, 0  ;;  %vm1736_vm8 = vcmp.eq.s32.totalorder %v2462_v26, 1  ;;  %vm1738_vm9 = vcmp.eq.s32.totalorder %v2462_v26, 2  ;;  %vm1740_vm10 = vcmp.eq.s32.totalorder %v2462_v26, 3 }
  0x24   :  { %v1742_v27 = vsel %vm1734_vm7, 1.0, %v2263_v51 }
  0x81   :  { %v34_v29 = vpop.permute.xlu0 %33 }
  0x82   :  { %vm38_vm0 = vcmp.eq.s32.totalorder %v34_v29, %v2370_v28  ;;  %v2159_v29 = vpack.i.bf16 %v1742_v27, %v1742_v27 }
  0x83   :  { %1949 = vmatprep.mubr.msk.f32.mxu0 %vm38_vm0, %v2262_v30 }
  0x85   :  { %v37_v31 = vpop.permute.xlu0 %36 }
  0x86   :  { %vm39_vm1 = vcmp.eq.s32.totalorder %v37_v31, %v2370_v28 }
  0x87   :  { %1950 = vmatmul.mubr.msk.f32.vlgmr.msra.gmra.mrb[0].mxu0 %vm39_vm1, %v2262_v30  ;;  %v1744_v30 = vsel %vm1736_vm8, 1.0, %v2263_v51 }
  0x88   :  { %2024 = vmatprep.mubr.msk.bf16.mxu0 %vm2264_vm3, %v2263_v51  ;;  %v2164_v31 = vpack.i.bf16 %v1744_v30, %v1744_v30 }
 0x15a   :  { %v1951_v33 = vpop.f32.mrb[0].mxu0 }
 0x15b   :  { %v128_v35 = vpop.f32.mrb[1].mxu0  ;;  %v2382_v37 = vadd.f32 %v1951_v33, %v61_v34  ;;  %v1748_v34 = vsel %vm1740_vm10, 1.0, %v2263_v51 }
 0x15c   :  { %v2380_v36 = vadd.f32 %v128_v35, %v60_v32  ;;  %v1746_v32 = vsel %vm1738_vm9, 1.0, %v2263_v51  ;;  %v2174_v35 = vpack.i.bf16 %v1748_v34, %v1748_v34 }
 0x15d   :  { %v314_v39 = vsel %vm310_vm2, %v2382_v37, 0.0  ;;  %v2169_v33 = vpack.i.bf16 %v1746_v32, %v1746_v32 }
 0x15e   :  { %v311_v38 = vsel %vm310_vm2, %v2380_v36, 0.0 }
 0x15f   :  { %312 = vadd.xlane.f32.xlu1 %v311_v38 }
 0x163   :  { %315 = vadd.xlane.f32.xlu1 %v314_v39 }
 0x1ec   :  { %v313_v40 = vpop.xlane.xlu1 %312 }
 0x1ed   :  { %v318_v41 = vmul.f32 0.03125, %v313_v40  ;;  %v143_v40 = vsel %vm142_vm11, 1, %v2261_v2 }
 0x1ef   :  { %v320_v42 = vsub.f32 %v2380_v36, %v318_v41  ;;  %v144_v41 = vadd.s32 %v143_v40, %v141_v21 }
 0x1f0   :  { %v316_v43 = vpop.xlane.xlu1 %315 }
 0x1f1   :  { %v319_v44 = vmul.f32 0.03125, %v316_v43  ;;  %v322_v45 = vmul.f32 %v320_v42, %v320_v42  ;;  %v146_v43 = vsel %vm145_vm12, 1, %v2261_v2 }
 0x1f3   :  { %v321_v46 = vsub.f32 %v2382_v37, %v319_v44  ;;  %v324_v47 = vsel %vm310_vm2, %v322_v45, 0.0  ;;  %v2494_v44 = vadd.s32 %v146_v43, %v144_v41 }
 0x1f4   :  { %325 = vadd.xlane.f32.xlu0 %v324_v47 }
 0x1f5   :  { %v323_v48 = vmul.f32 %v321_v46, %v321_v46  ;;  %vm1726_vm14 = vcmp.eq.s32.totalorder %v2494_v44, 0  ;;  %vm1727_vm0 = vcmp.eq.s32.totalorder %v2494_v44, 1  ;;  %vm1728_vm1 = vcmp.eq.s32.totalorder %v2494_v44, 2 }
 0x1f6   :  { %vm1729_vm4 = vcmp.eq.s32.totalorder %v2494_v44, 3 }
 0x1f7   :  { %v327_v49 = vsel %vm310_vm2, %v323_v48, 0.0 }
 0x1f8   :  { %328 = vadd.xlane.f32.xlu1 %v327_v49  ;;  %v2501_v49 = vsel %vm1726_vm14, 1.0, %v2263_v51 }
 0x281   :  { %v326_v53 = vpop.xlane.xlu0 %325 }
 0x282   :  { %v330_v54 = vmul.f32 0.03125, %v326_v53 }
 0x284   :  { %v332_v55 = vadd.f32 1e-05, %v330_v54  ;;  %v2506_v54 = vsel %vm1727_vm0, 1.0, %v2263_v51 }
 0x285   :  { %v329_v56 = vpop.xlane.xlu1 %328 }
 0x286   :  { %2205 = vrsqrt.f32 %v332_v55  ;;  %v331_v57 = vmul.f32 0.03125, %v329_v56 }
 0x288   :  { %v333_v58 = vadd.f32 1e-05, %v331_v57 }
 0x28a   :  { %2207 = vrsqrt.f32 %v333_v58 }
 0x290   :  { %v2206_v62 = vpop.eup %2205 }
 0x291   :  { %v336_v63 = vmul.f32 %v2206_v62, %v320_v42 }
 0x293   :  { %v342_v5 = vmul.f32 %v341_v0, %v336_v63 }
 0x294   :  { %v2208_v3 = vpop.eup %2207 }
 0x295   :  { %v337_v4 = vmul.f32 %v2208_v3, %v321_v46  ;;  %v348_v8 = vadd.f32 %v347_v6, %v342_v5 }
 0x297   :  { %v343_v7 = vmul.f32 %v341_v0, %v337_v4 }
 0x299   :  { %v349_v9 = vadd.f32 %v347_v6, %v343_v7 }
 0x29b   :  { %v350_v10 = vpack.c.bf16 %v349_v9, %v348_v8  ;;  %v2519_v9 = vsel %vm1728_vm1, 1.0, %v2263_v51  ;;  %vm592_vm1 = vcmask 523264  }
 0x29d   :  { %1957 = vmatmul.mubr.msk.bf16.vlgmr.msra.gmra.mrb[0].mxu1 %vm310_vm2, %v350_v10 }
 0x29e   :  { %1964 = vmatprep.mubr.msk.bf16.mxu1 %vm2264_vm3, %v2263_v51 }
 0x370   :  { %v2430_v11 = vpop.f32.mrb[0].mxu1 }
 0x371   :  { %409 = vrot.lane.b32.xlu1 %v2430_v11, %s2265_s21  ;;  %v1958_v12 = vpop.f32.mrb[1].mxu1 }
 0x372   :  { %v2434_v13 = vpop.f32.mrb[2].mxu1 }
 0x373   :  { %v545_v14 = vpack.c.bf16 %v2434_v13, %v2430_v11  ;;  %v1959_v15 = vpop.f32.mrb[3].mxu1 }
 0x374   :  { %v2525_v15 = vsel %vm1729_vm4, 1.0, %v2263_v51  ;;  %vm2605_vm4 = vmpackc.low %vm1734_vm7, %vm1734_vm7 }
 0x375   :  { %411 = vrot.lane.b32.xlu1 %v2434_v13, %s2265_s21  ;;  %vm2630_vm7 = vmpackc.low %vm1738_vm9, %vm1738_vm9 }
 0x3e3   :  { %v410_v16 = vpop.permute.xlu1 %409 }
 0x3e4   :  { %415 = vxpose.xlu1.b32.start [1/2] (short) (narrow) %v410_v16, 32 }
 0x3e7   :  { %v412_v17 = vpop.permute.xlu1 %411 }
 0x3e8   :  { %416 = vxpose.xlu1.b32.end [2/2] (short) (narrow) %v412_v17, 32 }
 0x464   :  { %v431_v18 = vpop.trf.xlu1 }
 0x465   :  { %451 = vrot.lane.b32.xlu0 %v431_v18, %s2266_s22 }
 0x468   :  { %v432_v19 = vpop.trf.xlu1 }
 0x469   :  { %463 = vrot.lane.b32.xlu0 %v431_v18, %s2267_s23 }
 0x46c   :  { %v2442_v20 = vpop.trf.xlu1 }
 0x46d   :  { %475 = vrot.lane.b32.xlu0 %v431_v18, %s2268_s24  ;;  %455 = vrot.lane.b32.xlu1 %v2442_v20, %s2266_s22 }
 0x470   :  { %v2460_v25 = vpop.trf.xlu1 }
 0x471   :  { %453 = vrot.lane.b32.xlu0 %v432_v19, %s2266_s22 }
 0x475   :  { %465 = vrot.lane.b32.xlu0 %v432_v19, %s2267_s23 }
 0x479   :  { %477 = vrot.lane.b32.xlu0 %v432_v19, %s2268_s24 }
 0x47d   :  { %467 = vrot.lane.b32.xlu0 %v2442_v20, %s2267_s23 }
 0x481   :  { %479 = vrot.lane.b32.xlu0 %v2442_v20, %s2268_s24 }
 0x485   :  { %457 = vrot.lane.b32.xlu0 %v2460_v25, %s2266_s22 }
 0x489   :  { %469 = vrot.lane.b32.xlu0 %v2460_v25, %s2267_s23 }
 0x48d   :  { %481 = vrot.lane.b32.xlu0 %v2460_v25, %s2268_s24 }
 0x491   :  { %2160 = vrot.lane.b32.xlu0 %v2159_v29, %s2269_s25 }
 0x495   :  { %2165 = vrot.lane.b32.xlu0 %v2164_v31, %s2269_s25 }
 0x499   :  { %2170 = vrot.lane.b32.xlu0 %v2169_v33, %s2269_s25 }
 0x49d   :  { %2175 = vrot.lane.b32.xlu0 %v2174_v35, %s2269_s25 }
 0x4d7   :  { %v452_v38 = vpop.permute.xlu0 %451 }
 0x4d8   :  { %v488_v47 = vsel %vm487_vm13, %v431_v18, %v452_v38 }
 0x4db   :  { %v464_v39 = vpop.permute.xlu0 %463 }
 0x4dc   :  { %v492_v48 = vsel %vm310_vm2, %v488_v47, %v464_v39 }
 0x4df   :  { %v476_v42 = vpop.permute.xlu0 %475  ;;  %v456_v5 = vpop.permute.xlu1 %455 }
 0x4e0   :  { %v497_v53 = vsel %vm496_vm15, %v492_v48, %v476_v42  ;;  %v490_v7 = vsel %vm487_vm13, %v2442_v20, %v456_v5 }
 0x4e1   :  { %v501_v58 = vmul.f32 %v2501_v49, %v497_v53 }
 0x4e3   :  { %v454_v45 = vpop.permute.xlu0 %453 }
 0x4e4   :  { %v489_v2 = vsel %vm487_vm13, %v432_v19, %v454_v45 }
 0x4e7   :  { %v466_v46 = vpop.permute.xlu0 %465 }
 0x4e8   :  { %v493_v55 = vsel %vm310_vm2, %v489_v2, %v466_v46 }
 0x4eb   :  { %v478_v56 = vpop.permute.xlu0 %477 }
 0x4ec   :  { %v498_v57 = vsel %vm496_vm15, %v493_v55, %v478_v56  ;;  %v148_v56 = vmul.u32 16, %v2494_v44 }
 0x4ed   :  { %v502_v62 = vmul.f32 %v2506_v54, %v498_v57 }
 0x4ee   :  { %v149_v57 = vsub.s32 %v2370_v28, %v148_v56 }
 0x4ef   :  { %v546_v63 = vpack.c.bf16 %v502_v62, %v501_v58  ;;  %v468_v0 = vpop.permute.xlu0 %467 }
 0x4f0   :  { %v494_v8 = vsel %vm310_vm2, %v490_v7, %v468_v0  ;;  %vm154_vm5 = vcmp.ge.s32.totalorder %v149_v57, 8  ;;  %vm158_vm11 = vcmp.ge.s32.totalorder %v2412_v59, %v149_v57 }
 0x4f1   :  { %1961 = vmatpush3.bf16.msra.mxu1 %v546_v63  ;;  %vm1833_vm6 = vmneg %vm154_vm5 }
 0x4f2   :  { %1962 = vmatprep.subr.bf16.mxu1 %v2263_v51  ;;  %vm160_vm14 = vmand %vm1833_vm6, %vm158_vm11 }
 0x4f3   :  { %v480_v3 = vpop.permute.xlu0 %479 }
 0x4f4   :  { %v499_v10 = vsel %vm496_vm15, %v494_v8, %v480_v3 }
 0x4f5   :  { %v503_v19 = vmul.f32 %v2519_v9, %v499_v10 }
 0x4f7   :  { %v458_v4 = vpop.permute.xlu0 %457 }
 0x4f8   :  { %v491_v12 = vsel %vm487_vm13, %v2460_v25, %v458_v4 }
 0x4fb   :  { %v470_v6 = vpop.permute.xlu0 %469 }
 0x4fc   :  { %v495_v16 = vsel %vm310_vm2, %v491_v12, %v470_v6 }
 0x4ff   :  { %v482_v17 = vpop.permute.xlu0 %481 }
 0x500   :  { %v500_v18 = vsel %vm496_vm15, %v495_v16, %v482_v17 }
 0x501   :  { %v504_v20 = vmul.f32 %v2525_v15, %v500_v18 }
 0x503   :  { %v547_v21 = vpack.c.bf16 %v504_v20, %v503_v19  ;;  %v2531_v22 = vpop.permute.xlu0 %2160 }
 0x504   :  { %v2163_v23 = vunpack.i.h.bf16 %v2531_v22  ;;  %v2162_v24 = vunpack.i.l.bf16 %v2531_v22 }
 0x505   :  { %1963 = vmatpush3.bf16.msra.mxu1 %v547_v21 }
 0x506   :  { %v538_v25 = vmul.f32 %v2163_v23, %v2434_v13  ;;  %v537_v27 = vmul.f32 %v2162_v24, %v2430_v11  ;;  %1968 = vmatprep.subr.bf16.mxu1 %v2263_v51 }
 0x507   :  { %v2542_v29 = vpop.permute.xlu0 %2165 }
 0x508   :  { %v2168_v30 = vunpack.i.h.bf16 %v2542_v29  ;;  %v2167_v31 = vunpack.i.l.bf16 %v2542_v29  ;;  %1965 = vmatmul.mubr.msk.bf16.vlgmr.msra.gmra.mrb[4].mxu1 %vm310_vm2, %v545_v14  ;;  %v606_v32 = vpack.c.bf16 %v538_v25, %v537_v27  ;;  %v2271_v25 = vmov 1.0|1.0  }
 0x509   :  { %1976 = vmatprep.mubr.msk.bf16.mxu1 %vm2264_vm3, %v2263_v51 }
 0x50a   :  { %v540_v33 = vmul.f32 %v2168_v30, %v2434_v13  ;;  %v539_v34 = vmul.f32 %v2167_v31, %v2430_v11  ;;  %614 = vrot.lane.b32.xlu0 %v606_v32, %s2269_s25 }
 0x50b   :  { %v2559_v35 = vpop.permute.xlu0 %2170 }
 0x50c   :  { %v2173_v38 = vunpack.i.h.bf16 %v2559_v35  ;;  %v2172_v14 = vunpack.i.l.bf16 %v2559_v35  ;;  %v607_v39 = vpack.c.bf16 %v540_v33, %v539_v34 }
 0x50e   :  { %v542_v40 = vmul.f32 %v2173_v38, %v2434_v13  ;;  %v541_v41 = vmul.f32 %v2172_v14, %v2430_v11  ;;  %616 = vrot.lane.b32.xlu1 %v607_v39, %s2269_s25 }
 0x50f   :  { %v2570_v42 = vpop.permute.xlu0 %2175 }
 0x510   :  { %v2178_v43 = vunpack.i.h.bf16 %v2570_v42  ;;  %v2177_v45 = vunpack.i.l.bf16 %v2570_v42  ;;  %v608_v46 = vpack.c.bf16 %v542_v40, %v541_v41 }
 0x512   :  { %v544_v47 = vmul.f32 %v2178_v43, %v2434_v13  ;;  %v543_v48 = vmul.f32 %v2177_v45, %v2430_v11  ;;  %v139_v13 = vadd.s32 8, %v2412_v59  ;;  %v2270_v11 = vmov -inf  }
 0x513   :  { %v2586_v58 = vsel %vm160_vm14, 0.0, %v2270_v11 }
 0x514   :  { %v609_v53 = vpack.c.bf16 %v544_v47, %v543_v48  ;;  %vm159_vm12 = vcmp.ge.s32.totalorder %v139_v13, %v149_v57 }
 0x515   :  { %vm161_vm0 = vmand %vm154_vm5, %vm159_vm12 }
 0x516   :  { %v2588_v63 = vsel %vm161_vm0, 0.0, %v2270_v11  ;;  %vm2619_vm5 = vmpackc.low %vm1736_vm8, %vm1736_vm8 }
 0x517   :  { %vm2641_vm8 = vmpackc.low %vm1740_vm10, %vm1740_vm10 }
 0x57c   :  { %v615_v2 = vpop.permute.xlu0 %614 }
 0x57d   :  { %1969 = vmatpush3.bf16.msra.mxu1 %v615_v2 }
 0x57e   :  { %1970 = vmatprep.subr.bf16.mxu1 %v2263_v51 }
 0x580   :  { %v617_v55 = vpop.permute.xlu1 %616 }
 0x581   :  { %1971 = vmatpush3.bf16.msra.mxu1 %v617_v55 }
 0x582   :  { %1972 = vmatprep.subr.bf16.mxu1 %v2263_v51 }
 0x5db   :  { %v585_v62 = vpop.f32.mrb[4].mxu1 }
 0x5dc   :  { %v586_v44 = vadd.f32 %v585_v62, %v2586_v58  ;;  %v1966_v0 = vpop.f32.mrb[5].mxu1  ;;  %v718_v62 = vsub.s32 2, %v2412_v59 }
 0x5dd   :  { %v588_v28 = vpop.f32.mrb[6].mxu1 }
 0x5de   :  { %v589_v3 = vadd.f32 %v588_v28, %v2588_v63  ;;  %v1967_v4 = vpop.f32.mrb[7].mxu1  ;;  %v593_v5 = vsel %vm592_vm1, %v586_v44, -inf }
 0x5df   :  { %594 = vmax.xlane.f32.xlu1 %v593_v5 }
 0x5e0   :  { %v596_v6 = vsel %vm592_vm1, %v589_v3, -inf }
 0x5e1   :  { %597 = vmax.xlane.f32.xlu0 %v596_v6 }
 0x5f0   :  { %618 = vrot.lane.b32.xlu1 %v608_v46, %s2269_s25 }
 0x5f4   :  { %720 = vrot.lane.b32.xlu1 %v2395_v50, %s2267_s23 }
 0x5f7   :  { %620 = vrot.lane.b32.xlu0 %v609_v53, %s2269_s25 }
 0x5fb   :  { %722 = vrot.lane.b32.xlu0 %v2403_v52, %s2267_s23  ;;  %v892_v52 = vsub.s32 5, %v2412_v59 }
 0x5fd   :  { %v893_v27 = vrot.slane %v2418_v61, %v892_v52 }
 0x66c   :  { %v595_v7 = vpop.xlane.xlu1 %594 }
 0x66d   :  { %v599_v8 = vsub.f32 %v586_v44, %v595_v7  ;;  %v719_v44 = vrot.slane %v2418_v61, %v718_v62 }
 0x66e   :  { %v598_v10 = vpop.xlane.xlu0 %597 }
 0x66f   :  { %v601_v12 = vmul.f32 1.442695, %v599_v8  ;;  %v600_v16 = vsub.f32 %v589_v3, %v598_v10 }
 0x670   :  { %v619_v17 = vpop.permute.xlu1 %618 }
 0x671   :  { %v603_v18 = vmul.f32 1.442695, %v600_v16  ;;  %1973 = vmatpush3.bf16.msra.mxu1 %v619_v17  ;;  %2209 = vpow2.f32 %v601_v12 }
 0x672   :  { %1974 = vmatprep.subr.bf16.mxu1 %v2263_v51  ;;  %v621_v19 = vpop.permute.xlu0 %620 }
 0x673   :  { %2211 = vpow2.f32 %v603_v18 }
 0x674   :  { %v721_v34 = vpop.permute.xlu1 %720 }
 0x675   :  { %1975 = vmatpush3.bf16.msra.mxu1 %v621_v19 }
 0x676   :  { %1980 = vmatprep.subr.bf16.mxu1 %v2263_v51  ;;  %v723_v26 = vpop.permute.xlu0 %722 }
 0x67b   :  { %v2210_v50 = vpop.eup %2209 }
 0x67d   :  { %v2212_v20 = vpop.eup %2211 }
 0x67e   :  { %v605_v21 = vpack.c.bf16 %v2212_v20, %v2210_v50 }
 0x680   :  { %1977 = vmatmul.mubr.msk.bf16.vlgmr.msra.gmra.mrb[8].mxu1 %vm592_vm1, %v605_v21 }
 0x681   :  { %1981 = vmatpush3.bf16.msk.msra.mxu1 %vm2605_vm4, %v2271_v25  ;;  %1988 = vmatprep.mubr.msk.bf16.mxu1 %vm2264_vm3, %v2263_v51 }
 0x682   :  { %1982 = vmatprep.subr.bf16.mxu1 %v2263_v51 }
 0x685   :  { %1983 = vmatpush3.bf16.msk.msra.mxu1 %vm2619_vm5, %v2271_v25 }
 0x686   :  { %1984 = vmatprep.subr.bf16.mxu1 %v2263_v51 }
 0x689   :  { %1985 = vmatpush3.bf16.msk.msra.mxu1 %vm2630_vm7, %v2271_v25 }
 0x68a   :  { %1986 = vmatprep.subr.bf16.mxu1 %v2263_v51 }
 0x68d   :  { %1987 = vmatpush3.bf16.msk.msra.mxu1 %vm2641_vm8, %v2271_v25 }
 0x68e   :  { %1992 = vmatprep.subr.bf16.mxu1 %v2263_v51 }
 0x690   :  { %1989 = vmatmul.mubr.msk.bf16.vlgmr.msra.gmra.mrb[12].mxu1 %vm592_vm1, %v605_v21 }
 0x691   :  { %1996 = vmatprep.mubr.msk.bf16.mxu1 %vm2264_vm3, %v2263_v51  ;;  %1993 = vmatpush3.bf16.msra.mxu1 %v721_v34 }
 0x692   :  { %1994 = vmatprep.subr.bf16.mxu1 %v2263_v51 }
 0x695   :  { %1995 = vmatpush3.bf16.msra.mxu1 %v723_v26  ;;  %v2181_v26 = vld [vmem:[%s3025_s3 + $0x4] ss:$8 sps:$4 sm:$0xff]  }
 0x696   :  { %2000 = vmatprep.subr.bf16.mxu1 %v2263_v51 }
 0x753   :  { %v663_v39 = vpop.f32.mrb[8].mxu1 }
 0x754   :  { %v1978_v40 = vpop.f32.mrb[9].mxu1 }
 0x755   :  { %v666_v41 = vpop.f32.mrb[10].mxu1  ;;  %v2183_v40 = vld [vmem:[%s3026_s4] sm:$0xff]  }
 0x756   :  { %v1979_v46 = vpop.f32.mrb[11].mxu1  ;;  %2009 = vmatpush3.bf16.msra.mxu0 %v2183_v40 }
 0x757   :  { %2010 = vmatprep.subr.bf16.mxu0 %v2263_v51  ;;  %v2185_v46 = vld [vmem:[%s3026_s4 + $0x10] sm:$0xff]  }
 0x763   :  { %v704_v47 = vpop.f32.mrb[12].mxu1 }
 0x764   :  { %2213 = vrcp.f32 %v704_v47  ;;  %v1990_v48 = vpop.f32.mrb[13].mxu1  ;;  %v2186_v47 = vld [vmem:[%s3026_s4 + $0x18] sm:$0xff]  }
 0x765   :  { %v707_v53 = vpop.f32.mrb[14].mxu1  ;;  %v2187_v48 = vld [vmem:[%s3026_s4 + $0x20] sm:$0xff]  }
 0x766   :  { %2215 = vrcp.f32 %v707_v53  ;;  %v1991_v2 = vpop.f32.mrb[15].mxu1  ;;  %v2188_v53 = vld [vmem:[%s3026_s4 + $0x28] sm:$0xff]  }
 0x76e   :  { %v2214_v55 = vpop.eup %2213 }
 0x76f   :  { %v713_v56 = vmul.f32 %v2214_v55, %v663_v39  ;;  %v2182_v39 = vld [vmem:[%s3025_s3 + $0x14] ss:$8 sps:$4 sm:$0xff]  }
 0x770   :  { %v2216_v57 = vpop.eup %2215 }
 0x771   :  { %v714_v13 = vmul.f32 %v2216_v57, %v666_v41  ;;  %v2184_v41 = vld [vmem:[%s3026_s4 + $0x8] sm:$0xff]  }
 0x772   :  { %2011 = vmatpush3.bf16.msra.mxu0 %v2184_v41 }
 0x773   :  { %v715_v11 = vpack.c.bf16 %v714_v13, %v713_v56  ;;  %2012 = vmatprep.subr.bf16.mxu0 %v2263_v51 }
 0x775   :  { %1997 = vmatmul.mubr.msk.bf16.vlgmr.msra.gmra.mrb[16].mxu1 %vm310_vm2, %v715_v11 }
 0x776   :  { %2004 = vmatprep.mubr.msk.bf16.mxu1 %vm2264_vm3, %v2263_v51  ;;  %2001 = vmatpush3.bf16.msra.mxu1 %v2181_v26 }
 0x777   :  { %2002 = vmatprep.subr.bf16.mxu1 %v2263_v51  ;;  %2013 = vmatpush3.bf16.msra.mxu0 %v2185_v46 }
 0x778   :  { %2014 = vmatprep.subr.bf16.mxu0 %v2263_v51 }
 0x77a   :  { %2003 = vmatpush3.bf16.msra.mxu1 %v2182_v39 }
 0x77b   :  { %2028 = vmatprep.subr.bf16.mxu1 %v2263_v51  ;;  %2015 = vmatpush3.bf16.msra.mxu0 %v2186_v47 }
 0x77c   :  { %2016 = vmatprep.subr.bf16.mxu0 %v2263_v51 }
 0x77f   :  { %2017 = vmatpush3.bf16.msra.mxu0 %v2187_v48 }
 0x780   :  { %2018 = vmatprep.subr.bf16.mxu0 %v2263_v51 }
 0x783   :  { %2019 = vmatpush3.bf16.msra.mxu0 %v2188_v53 }
 0x784   :  { %2020 = vmatprep.subr.bf16.mxu0 %v2263_v51 }
 0x848   :  { %v763_v0 = vpop.f32.mrb[16].mxu1 }
 0x849   :  { %v764_v28 = vadd.f32 %v763_v0, %v719_v44  ;;  %v1998_v3 = vpop.f32.mrb[17].mxu1 }
 0x84a   :  { %v766_v4 = vpop.f32.mrb[18].mxu1 }
 0x84b   :  { %v2662_v5 = vadd.f32 %v764_v28, %v2380_v36  ;;  %v767_v6 = vadd.f32 %v766_v4, %v719_v44  ;;  %v1999_v7 = vpop.f32.mrb[19].mxu1  ;;  %v800_v44 = vsub.s32 3, %v2412_v59  ;;  %v806_v4 = vsub.s32 4, %v2412_v59 }
 0x84d   :  { %v2665_v8 = vadd.f32 %v767_v6, %v2382_v37  ;;  %v772_v10 = vsel %vm310_vm2, %v2662_v5, 0.0  ;;  %v801_v28 = vrot.slane %v2418_v61, %v800_v44 }
 0x84e   :  { %773 = vadd.xlane.f32.xlu1 %v772_v10 }
 0x84f   :  { %v775_v12 = vsel %vm310_vm2, %v2665_v8, 0.0 }
 0x850   :  { %776 = vadd.xlane.f32.xlu0 %v775_v12  ;;  %v807_v12 = vrot.slane %v2418_v61, %v806_v4 }
 0x8db   :  { %v774_v16 = vpop.xlane.xlu1 %773 }
 0x8dc   :  { %v778_v17 = vmul.f32 0.03125, %v774_v16 }
 0x8dd   :  { %v777_v18 = vpop.xlane.xlu0 %776 }
 0x8de   :  { %v780_v19 = vsub.f32 %v2662_v5, %v778_v17  ;;  %v779_v36 = vmul.f32 0.03125, %v777_v18 }
 0x8e0   :  { %v781_v50 = vsub.f32 %v2665_v8, %v779_v36  ;;  %v782_v20 = vmul.f32 %v780_v19, %v780_v19 }
 0x8e2   :  { %v784_v37 = vsel %vm310_vm2, %v782_v20, 0.0  ;;  %v783_v21 = vmul.f32 %v781_v50, %v781_v50  ;;  %v1765_v20 = vld [vmem:[%s3027_s5] ss:$0 sm:$0xff] }
 0x8e3   :  { %785 = vadd.xlane.f32.xlu0 %v784_v37 }
 0x8e4   :  { %v787_v34 = vsel %vm310_vm2, %v783_v21, 0.0 }
 0x8e7   :  { %788 = vadd.xlane.f32.xlu0 %v787_v34 }
 0x970   :  { %v786_v2 = vpop.xlane.xlu0 %785 }
 0x971   :  { %v790_v55 = vmul.f32 0.03125, %v786_v2 }
 0x973   :  { %v792_v56 = vadd.f32 1e-05, %v790_v55 }
 0x974   :  { %v789_v57 = vpop.xlane.xlu0 %788 }
 0x975   :  { %2217 = vrsqrt.f32 %v792_v56  ;;  %v791_v13 = vmul.f32 0.03125, %v789_v57 }
 0x977   :  { %v793_v11 = vadd.f32 1e-05, %v791_v13 }
 0x979   :  { %2219 = vrsqrt.f32 %v793_v11 }
 0x97f   :  { %v2218_v0 = vpop.eup %2217 }
 0x980   :  { %v796_v3 = vmul.f32 %v2218_v0, %v780_v19  ;;  %v2189_v19 = vld [vmem:[%s3026_s4 + $0x30] sm:$0xff]  }
 0x981   :  { %2021 = vmatpush3.bf16.msra.mxu0 %v2189_v19 }
 0x982   :  { %v802_v7 = vmul.f32 %v801_v28, %v796_v3  ;;  %2022 = vmatprep.subr.bf16.mxu0 %v2263_v51 }
 0x983   :  { %v2220_v6 = vpop.eup %2219 }
 0x984   :  { %v797_v10 = vmul.f32 %v2220_v6, %v781_v50  ;;  %v808_v17 = vadd.f32 %v807_v12, %v802_v7  ;;  %v2190_v50 = vld [vmem:[%s3026_s4 + $0x38] sm:$0xff]  }
 0x985   :  { %2023 = vmatpush3.bf16.msra.mxu0 %v2190_v50 }
 0x986   :  { %v803_v16 = vmul.f32 %v801_v28, %v797_v10  ;;  %2056 = vmatprep.subr.bf16.mxu0 %v2263_v51 }
 0x988   :  { %v809_v18 = vadd.f32 %v807_v12, %v803_v16  ;;  %v2768_v12 = vld [vmem:[%s3025_s3 + $0x20] ss:$8 sps:$4 sm:$0xff]   ;;  %v2775_v16 = vld [vmem:[%s3025_s3 + $0x30] ss:$8 sps:$4 sm:$0xff]  }
 0x98a   :  { %v810_v36 = vpack.c.bf16 %v809_v18, %v808_v17 }
 0x98c   :  { %2005 = vmatmul.mubr.msk.bf16.vlgmr.msra.gmra.mrb[20].mxu1 %vm310_vm2, %v810_v36 }
 0x98d   :  { %2032 = vmatprep.mubr.msk.bf16.mxu1 %vm2264_vm3, %v2263_v51  ;;  %2029 = vmatpush3.bf16.msra.mxu1 %v2768_v12 }
 0x98e   :  { %2030 = vmatprep.subr.bf16.mxu1 %v2263_v51 }
 0x991   :  { %2031 = vmatpush3.bf16.msra.mxu1 %v2775_v16 }
 0x992   :  { %2036 = vmatprep.subr.bf16.mxu1 %v2263_v51 }
 0xa5f   :  { %v864_v37 = vpop.f32.mrb[20].mxu1 }
 0xa60   :  { %v865_v21 = vadd.f32 %v1765_v20, %v864_v37  ;;  %v2006_v34 = vpop.f32.mrb[21].mxu1  ;;  %v2782_v37 = vld [vmem:[%s3024_s2 + $0x8] sm:$0x3f]  ;;  %s1709_s2 = sshll.u32 %s2272_s10, 4  ;;  %s1710_s2 = int_to_ptr.vmem [resolvable:$true] %s1709_s2 }
 0xa61   :  { %v867_v26 = vpop.f32.mrb[22].mxu1  ;;  %p2242_p1 = scmp.lt.s32.totalorder %s1710_s2, %s1710_s2 }
 0xa62   :  { %v868_v39 = vadd.f32 %v1765_v20, %v867_v26  ;;  %v2007_v40 = vpop.f32.mrb[23].mxu1  ;;  %v871_v41 = vmax.f32 %v865_v21, 0.0  ;;  %v1026_v21 = vrot.slane %v2782_v37, %v340_v60 }
 0xa63   :  { %v1032_v40 = vrot.slane %v2782_v37, %v346_v1 }
 0xa64   :  { %v872_v46 = vmax.f32 %v868_v39, 0.0 }
 0xa66   :  { %v873_v47 = vpack.c.bf16 %v872_v46, %v871_v41 }
 0xa68   :  { %2025 = vmatmul.mubr.bf16.vlgmr.msra.gmra.mrb[4].mxu0 %v873_v47 }
 0xa69   :  { %2057 = vmatpush3.bf16.msk.msra.mxu0 %vm2605_vm4, %v2271_v25  ;;  %2064 = vmatprep.mubr.msk.bf16.mxu0 %vm2264_vm3, %v2263_v51 }
 0xa6a   :  { %2058 = vmatprep.subr.bf16.mxu0 %v2263_v51 }
 0xa6d   :  { %2059 = vmatpush3.bf16.msk.msra.mxu0 %vm2619_vm5, %v2271_v25 }
 0xa6e   :  { %2060 = vmatprep.subr.bf16.mxu0 %v2263_v51 }
 0xa71   :  { %2061 = vmatpush3.bf16.msk.msra.mxu0 %vm2630_vm7, %v2271_v25 }
 0xa72   :  { %2062 = vmatprep.subr.bf16.mxu0 %v2263_v51 }
 0xa75   :  { %2063 = vmatpush3.bf16.msk.msra.mxu0 %vm2641_vm8, %v2271_v25 }
 0xa76   :  { %2084 = vmatprep.subr.bf16.mxu0 %v2263_v51 }
 0xb3b   :  { %v976_v48 = vpop.f32.mrb[4].mxu0 }
 0xb3c   :  { %v977_v53 = vadd.f32 %v976_v48, %v893_v27  ;;  %v2026_v2 = vpop.f32.mrb[5].mxu0 }
 0xb3d   :  { %v979_v55 = vpop.f32.mrb[6].mxu0 }
 0xb3e   :  { %v2752_v32 = vadd.f32 %v977_v53, %v2662_v5  ;;  %v980_v56 = vadd.f32 %v979_v55, %v893_v27  ;;  %v2027_v57 = vpop.f32.mrb[7].mxu0 }
 0xb40   :  { %v2755_v33 = vadd.f32 %v980_v56, %v2665_v8  ;;  %v997_v25 = vsel %vm310_vm2, %v2752_v32, 0.0 }
 0xb41   :  { %998 = vadd.xlane.f32.xlu1 %v997_v25 }
 0xb42   :  { %v1000_v13 = vsel %vm310_vm2, %v2755_v33, 0.0 }
 0xb43   :  { %1001 = vadd.xlane.f32.xlu0 %v1000_v13 }
 0xbce   :  { %v999_v61 = vpop.xlane.xlu1 %998 }
 0xbcf   :  { %v1003_v11 = vmul.f32 0.03125, %v999_v61 }
 0xbd0   :  { %v1002_v0 = vpop.xlane.xlu0 %1001 }
 0xbd1   :  { %v1005_v28 = vsub.f32 %v2752_v32, %v1003_v11  ;;  %v1004_v5 = vmul.f32 0.03125, %v1002_v0 }
 0xbd3   :  { %v1006_v3 = vsub.f32 %v2755_v33, %v1004_v5  ;;  %v1007_v6 = vmul.f32 %v1005_v28, %v1005_v28 }
 0xbd5   :  { %v1009_v8 = vsel %vm310_vm2, %v1007_v6, 0.0  ;;  %v1008_v7 = vmul.f32 %v1006_v3, %v1006_v3 }
 0xbd6   :  { %1010 = vadd.xlane.f32.xlu1 %v1009_v8 }
 0xbd7   :  { %v1012_v10 = vsel %vm310_vm2, %v1008_v7, 0.0 }
 0xbd8   :  { %1013 = vadd.xlane.f32.xlu0 %v1012_v10 }
 0xc63   :  { %v1011_v17 = vpop.xlane.xlu1 %1010 }
 0xc64   :  { %v1015_v18 = vmul.f32 0.03125, %v1011_v17 }
 0xc65   :  { %v1014_v36 = vpop.xlane.xlu0 %1013 }
 0xc66   :  { %v1017_v19 = vadd.f32 1e-05, %v1015_v18  ;;  %v1016_v50 = vmul.f32 0.03125, %v1014_v36 }
 0xc68   :  { %2221 = vrsqrt.f32 %v1017_v19  ;;  %v1018_v20 = vadd.f32 1e-05, %v1016_v50 }
 0xc6a   :  { %2223 = vrsqrt.f32 %v1018_v20 }
 0xc72   :  { %v2222_v34 = vpop.eup %2221 }
 0xc73   :  { %v1021_v26 = vmul.f32 %v2222_v34, %v1005_v28 }
 0xc74   :  { %v2224_v39 = vpop.eup %2223 }
 0xc75   :  { %v1027_v41 = vmul.f32 %v1026_v21, %v1021_v26  ;;  %v1022_v46 = vmul.f32 %v2224_v39, %v1006_v3 }
 0xc77   :  { %v1028_v47 = vmul.f32 %v1026_v21, %v1022_v46  ;;  %v1033_v27 = vadd.f32 %v1032_v40, %v1027_v41 }
 0xc79   :  { %v1034_v48 = vadd.f32 %v1032_v40, %v1028_v47 }
 0xc7b   :  { %v1035_v53 = vpack.c.bf16 %v1034_v48, %v1033_v27 }
 0xc7d   :  { %2033 = vmatmul.mubr.msk.bf16.vlgmr.msra.gmra.mrb[24].mxu1 %vm310_vm2, %v1035_v53 }
 0xc7e   :  { %2040 = vmatprep.mubr.msk.bf16.mxu1 %vm2264_vm3, %v2263_v51 }
 0xd50   :  { %v2793_v2 = vpop.f32.mrb[24].mxu1 }
 0xd51   :  { %1094 = vrot.lane.b32.xlu1 %v2793_v2, %s2265_s21  ;;  %v2034_v60 = vpop.f32.mrb[25].mxu1  ;;  %v2802_v1 = vmul.f32 %v2162_v24, %v2793_v2  ;;  %v2807_v56 = vmul.f32 %v2167_v31, %v2793_v2  ;;  %v2812_v57 = vmul.f32 %v2172_v14, %v2793_v2  ;;  %v2836_v61 = vmul.f32 %v2177_v45, %v2793_v2 }
 0xd52   :  { %v2797_v55 = vpop.f32.mrb[26].mxu1 }
 0xd53   :  { %v1196_v25 = vpack.c.bf16 %v2797_v55, %v2793_v2  ;;  %1096 = vrot.lane.b32.xlu0 %v2797_v55, %s2265_s21  ;;  %v2035_v13 = vpop.f32.mrb[27].mxu1  ;;  %v2821_v24 = vmul.f32 %v2163_v23, %v2797_v55  ;;  %v2826_v31 = vmul.f32 %v2168_v30, %v2797_v55  ;;  %v2831_v14 = vmul.f32 %v2173_v38, %v2797_v55  ;;  %s2237_s21 = scalar_lea.vmem %s1710_s2, 256 }
 0xd54   :  { %v2841_v22 = vmul.f32 %v2178_v43, %v2797_v55  ;;  %p2238_p0 = scmp.ne.s32.totalorder %s1710_s2, %s2237_s21  ;;  %p2243_p2 = scmp.lt.s32.totalorder %s2237_s21, %s2237_s21 }
 0xd55   :  { %v1256_v23 = vpack.c.bf16 %v2821_v24, %v2802_v1  ;;  %v1257_v29 = vpack.c.bf16 %v2826_v31, %v2807_v56  ;;  %v1258_v30 = vpack.c.bf16 %v2831_v14, %v2812_v57 }
 0xd56   :  { %v1259_v35 = vpack.c.bf16 %v2841_v22, %v2836_v61  ;;  %p2244_p3 = por %p2243_p2, %p2242_p1 }
 0xd58   :  { %p2245_p4 = pnand %p2244_p3, %p2238_p0 }
 0xdc3   :  { %v1095_v38 = vpop.permute.xlu1 %1094 }
 0xdc4   :  { %1100 = vxpose.xlu1.b32.start [1/2] (short) (narrow) %v1095_v38, 32 }
 0xdc5   :  { %v1097_v45 = vpop.permute.xlu0 %1096 }
 0xdc8   :  { %1101 = vxpose.xlu1.b32.end [2/2] (short) (narrow) %v1097_v45, 32 }
 0xe44   :  { %v1116_v11 = vpop.trf.xlu1 }
 0xe45   :  { %1136 = vrot.lane.b32.xlu0 %v1116_v11, %s2266_s22 }
 0xe48   :  { %v1117_v42 = vpop.trf.xlu1 }
 0xe49   :  { %1148 = vrot.lane.b32.xlu0 %v1116_v11, %s2267_s23 }
 0xe4c   :  { %v1118_v43 = vpop.trf.xlu1 }
 0xe4d   :  { %1160 = vrot.lane.b32.xlu0 %v1116_v11, %s2268_s24  ;;  %1164 = vrot.lane.b32.xlu1 %v1118_v43, %s2268_s24 }
 0xe50   :  { %v1119_v0 = vpop.trf.xlu1 }
 0xe51   :  { %1138 = vrot.lane.b32.xlu0 %v1117_v42, %s2266_s22 }
 0xe55   :  { %1150 = vrot.lane.b32.xlu0 %v1117_v42, %s2267_s23 }
 0xe59   :  { %1162 = vrot.lane.b32.xlu0 %v1117_v42, %s2268_s24 }
 0xe5d   :  { %1140 = vrot.lane.b32.xlu0 %v1118_v43, %s2266_s22 }
 0xe61   :  { %1152 = vrot.lane.b32.xlu0 %v1118_v43, %s2267_s23 }
 0xe65   :  { %1142 = vrot.lane.b32.xlu0 %v1119_v0, %s2266_s22 }
 0xe69   :  { %1154 = vrot.lane.b32.xlu0 %v1119_v0, %s2267_s23 }
 0xe6d   :  { %1166 = vrot.lane.b32.xlu0 %v1119_v0, %s2268_s24 }
 0xeb7   :  { %v1137_v28 = vpop.permute.xlu0 %1136 }
 0xeb8   :  { %v1172_v7 = vsel %vm487_vm13, %v1116_v11, %v1137_v28 }
 0xebb   :  { %v1149_v5 = vpop.permute.xlu0 %1148 }
 0xebc   :  { %v1176_v10 = vsel %vm310_vm2, %v1172_v7, %v1149_v5 }
 0xebf   :  { %v1161_v3 = vpop.permute.xlu0 %1160  ;;  %v1165_v27 = vpop.permute.xlu1 %1164 }
 0xec0   :  { %v1180_v17 = vsel %vm496_vm15, %v1176_v10, %v1161_v3 }
 0xec1   :  { %v1184_v20 = vmul.f32 %v2501_v49, %v1180_v17 }
 0xec3   :  { %v1139_v6 = vpop.permute.xlu0 %1138 }
 0xec4   :  { %v1173_v18 = vsel %vm487_vm13, %v1117_v42, %v1139_v6 }
 0xec7   :  { %v1151_v8 = vpop.permute.xlu0 %1150 }
 0xec8   :  { %v1177_v36 = vsel %vm310_vm2, %v1173_v18, %v1151_v8 }
 0xecb   :  { %v1163_v19 = vpop.permute.xlu0 %1162 }
 0xecc   :  { %v1181_v50 = vsel %vm496_vm15, %v1177_v36, %v1163_v19 }
 0xecd   :  { %v1185_v21 = vmul.f32 %v2506_v54, %v1181_v50  ;;  %v1369_v50 = vrot.slane %v2782_v37, %v718_v62 }
 0xecf   :  { %v1197_v34 = vpack.c.bf16 %v1185_v21, %v1184_v20  ;;  %v1141_v26 = vpop.permute.xlu0 %1140 }
 0xed0   :  { %v1174_v41 = vsel %vm487_vm13, %v1118_v43, %v1141_v26 }
 0xed1   :  { %2037 = vmatpush3.bf16.msra.mxu1 %v1197_v34 }
 0xed2   :  { %2038 = vmatprep.subr.bf16.mxu1 %v2263_v51 }
 0xed3   :  { %v1153_v39 = vpop.permute.xlu0 %1152 }
 0xed4   :  { %v1178_v46 = vsel %vm310_vm2, %v1174_v41, %v1153_v39 }
 0xed5   :  { %v1182_v48 = vsel %vm496_vm15, %v1178_v46, %v1165_v27 }
 0xed6   :  { %v1186_v13 = vmul.f32 %v2519_v9, %v1182_v48 }
 0xed7   :  { %v1143_v40 = vpop.permute.xlu0 %1142 }
 0xed8   :  { %v1175_v53 = vsel %vm487_vm13, %v1119_v0, %v1143_v40 }
 0xedb   :  { %v1155_v47 = vpop.permute.xlu0 %1154 }
 0xedc   :  { %v1179_v49 = vsel %vm310_vm2, %v1175_v53, %v1155_v47 }
 0xedf   :  { %v1167_v54 = vpop.permute.xlu0 %1166 }
 0xee0   :  { %v1183_v60 = vsel %vm496_vm15, %v1179_v49, %v1167_v54 }
 0xee1   :  { %v1187_v38 = vmul.f32 %v2525_v15, %v1183_v60 }
 0xee3   :  { %v1198_v45 = vpack.c.bf16 %v1187_v38, %v1186_v13 }
 0xee5   :  { %2039 = vmatpush3.bf16.msra.mxu1 %v1198_v45  ;;  %v2193_v45 = vld [vmem:[%s3025_s3 + $0x24] ss:$8 sps:$4 sm:$0xff]  }
 0xee6   :  { %2044 = vmatprep.subr.bf16.mxu1 %v2263_v51 }
 0xee8   :  { %2041 = vmatmul.mubr.msk.bf16.vlgmr.msra.gmra.mrb[28].mxu1 %vm310_vm2, %v1196_v25 }
 0xee9   :  { %2052 = vmatprep.mubr.msk.bf16.mxu1 %vm2264_vm3, %v2263_v51 }
 0xfbb   :  { %v1236_v11 = vpop.f32.mrb[28].mxu1 }
 0xfbc   :  { %v1237_v42 = vadd.f32 %v1236_v11, %v2586_v58  ;;  %v2042_v43 = vpop.f32.mrb[29].mxu1  ;;  %v2194_v11 = vld [vmem:[%s3025_s3 + $0x34] ss:$8 sps:$4 sm:$0xff]  }
 0xfbd   :  { %v1239_v0 = vpop.f32.mrb[30].mxu1  ;;  %v2196_v43 = vld [vmem:[%s3026_s4 + $0x48] sm:$0xff]  }
 0xfbe   :  { %v1240_v9 = vadd.f32 %v1239_v0, %v2588_v63  ;;  %v2043_v15 = vpop.f32.mrb[31].mxu1  ;;  %v1243_v28 = vsel %vm592_vm1, %v1237_v42, -inf  ;;  %v2197_v0 = vld [vmem:[%s3026_s4 + $0x50] sm:$0xff]  }
 0xfbf   :  { %1244 = vmax.xlane.f32.xlu0 %v1243_v28  ;;  %v2199_v15 = vld [vmem:[%s3026_s4 + $0x60] sm:$0xff]   ;;  %v2200_v28 = vld [vmem:[%s3026_s4 + $0x68] sm:$0xff]  }
 0xfc0   :  { %v1246_v5 = vsel %vm592_vm1, %v1240_v9, -inf }
 0xfc1   :  { %1247 = vmax.xlane.f32.xlu1 %v1246_v5 }
 0xfd2   :  { %1372 = vrot.lane.b32.xlu1 %v2775_v16, %s2267_s23 }
 0xfd5   :  { %1264 = vrot.lane.b32.xlu0 %v1256_v23, %s2269_s25 }
 0xfd9   :  { %1266 = vrot.lane.b32.xlu0 %v1257_v29, %s2269_s25 }
 0xfdd   :  { %1268 = vrot.lane.b32.xlu0 %v1258_v30, %s2269_s25 }
 0xfe1   :  { %1270 = vrot.lane.b32.xlu0 %v1259_v35, %s2269_s25 }
 0xfe5   :  { %1370 = vrot.lane.b32.xlu0 %v2768_v12, %s2267_s23 }
0x104c   :  { %v1245_v58 = vpop.xlane.xlu0 %1244 }
0x104d   :  { %v1249_v63 = vsub.f32 %v1237_v42, %v1245_v58  ;;  %v2195_v42 = vld [vmem:[%s3026_s4 + $0x40] sm:$0xff]  }
0x104e   :  { %v1248_v16 = vpop.xlane.xlu1 %1247 }
0x104f   :  { %v1251_v2 = vmul.f32 1.442695, %v1249_v63  ;;  %v1250_v55 = vsub.f32 %v1240_v9, %v1248_v16  ;;  %v2198_v9 = vld [vmem:[%s3026_s4 + $0x58] sm:$0xff]  }
0x1050   :  { %v1265_v1 = vpop.permute.xlu0 %1264 }
0x1051   :  { %v1253_v56 = vmul.f32 1.442695, %v1250_v55  ;;  %2045 = vmatpush3.bf16.msra.mxu1 %v1265_v1  ;;  %2225 = vpow2.f32 %v1251_v2 }
0x1052   :  { %2046 = vmatprep.subr.bf16.mxu1 %v2263_v51  ;;  %v1373_v22 = vpop.permute.xlu1 %1372 }
0x1053   :  { %2227 = vpow2.f32 %v1253_v56  ;;  %v1451_v56 = vrot.slane %v2782_v37, %v800_v44  ;;  %v2201_v44 = vld [vmem:[%s3026_s4 + $0x70] sm:$0xff]  }
0x1054   :  { %v1267_v57 = vpop.permute.xlu0 %1266 }
0x1055   :  { %2047 = vmatpush3.bf16.msra.mxu1 %v1267_v57 }
0x1056   :  { %2048 = vmatprep.subr.bf16.mxu1 %v2263_v51 }
0x1058   :  { %v1269_v25 = vpop.permute.xlu0 %1268 }
0x1059   :  { %2049 = vmatpush3.bf16.msra.mxu1 %v1269_v25 }
0x105a   :  { %2050 = vmatprep.subr.bf16.mxu1 %v2263_v51 }
0x105b   :  { %v2226_v12 = vpop.eup %2225 }
0x105c   :  { %v1271_v24 = vpop.permute.xlu0 %1270 }
0x105d   :  { %v2228_v31 = vpop.eup %2227  ;;  %2051 = vmatpush3.bf16.msra.mxu1 %v1271_v24 }
0x105e   :  { %v1255_v14 = vpack.c.bf16 %v2228_v31, %v2226_v12  ;;  %2068 = vmatprep.subr.bf16.mxu1 %v2263_v51  ;;  %v1457_v31 = vrot.slane %v2782_v37, %v806_v4  ;;  %v2202_v4 = vld [vmem:[%s3026_s4 + $0x78] sm:$0xff]  }
0x1060   :  { %2053 = vmatmul.mubr.msk.bf16.vlgmr.msra.gmra.mrb[32].mxu1 %vm592_vm1, %v1255_v14  ;;  %2065 = vmatmul.mubr.msk.bf16.vlgmr.msra.gmra.mrb[8].mxu0 %vm592_vm1, %v1255_v14  ;;  %v1371_v61 = vpop.permute.xlu0 %1370 }
0x1061   :  { %2072 = vmatprep.mubr.msk.bf16.mxu1 %vm2264_vm3, %v2263_v51  ;;  %2100 = vmatprep.mubr.msk.bf16.mxu0 %vm2264_vm3, %v2263_v51 }
0x1062   :  { %2069 = vmatpush3.bf16.msra.mxu1 %v1371_v61  ;;  %2085 = vmatpush3.bf16.msra.mxu0 %v2195_v42 }
0x1063   :  { %2070 = vmatprep.subr.bf16.mxu1 %v2263_v51  ;;  %2086 = vmatprep.subr.bf16.mxu0 %v2263_v51 }
0x1066   :  { %2071 = vmatpush3.bf16.msra.mxu1 %v1373_v22  ;;  %2087 = vmatpush3.bf16.msra.mxu0 %v2196_v43 }
0x1067   :  { %2076 = vmatprep.subr.bf16.mxu1 %v2263_v51  ;;  %2088 = vmatprep.subr.bf16.mxu0 %v2263_v51 }
0x106a   :  { %2089 = vmatpush3.bf16.msra.mxu0 %v2197_v0 }
0x106b   :  { %2090 = vmatprep.subr.bf16.mxu0 %v2263_v51 }
0x106e   :  { %2091 = vmatpush3.bf16.msra.mxu0 %v2198_v9 }
0x106f   :  { %2092 = vmatprep.subr.bf16.mxu0 %v2263_v51 }
0x1072   :  { %2093 = vmatpush3.bf16.msra.mxu0 %v2199_v15 }
0x1073   :  { %2094 = vmatprep.subr.bf16.mxu0 %v2263_v51 }
0x1076   :  { %2095 = vmatpush3.bf16.msra.mxu0 %v2200_v28 }
0x1077   :  { %2096 = vmatprep.subr.bf16.mxu0 %v2263_v51 }
0x107a   :  { %2097 = vmatpush3.bf16.msra.mxu0 %v2201_v44 }
0x107b   :  { %2098 = vmatprep.subr.bf16.mxu0 %v2263_v51 }
0x107e   :  { %2099 = vmatpush3.bf16.msra.mxu0 %v2202_v4 }
0x1133   :  { %v1313_v23 = vpop.f32.mrb[32].mxu1  ;;  %v1354_v29 = vpop.f32.mrb[8].mxu0 }
0x1134   :  { %2229 = vrcp.f32 %v1354_v29  ;;  %v2054_v30 = vpop.f32.mrb[33].mxu1  ;;  %v2066_v35 = vpop.f32.mrb[9].mxu0  ;;  %v1801_v29 = vld [vmem:[%s3027_s5 + $0x1] ss:$0 sm:$0xff] }
0x1135   :  { %v1316_v3 = vpop.f32.mrb[34].mxu1  ;;  %v1357_v6 = vpop.f32.mrb[10].mxu0 }
0x1136   :  { %2231 = vrcp.f32 %v1357_v6  ;;  %v2055_v8 = vpop.f32.mrb[35].mxu1  ;;  %v2067_v7 = vpop.f32.mrb[11].mxu0 }
0x113e   :  { %v2230_v10 = vpop.eup %2229 }
0x113f   :  { %v1363_v17 = vmul.f32 %v2230_v10, %v1313_v23 }
0x1140   :  { %v2232_v18 = vpop.eup %2231 }
0x1141   :  { %v1364_v36 = vmul.f32 %v2232_v18, %v1316_v3 }
0x1143   :  { %v1365_v19 = vpack.c.bf16 %v1364_v36, %v1363_v17  ;;  %v2203_v36 = vld [vmem:[%s3028_s6] sm:$0xff]  }
0x1145   :  { %2073 = vmatmul.mubr.msk.bf16.vlgmr.msra.gmra.mrb[36].mxu1 %vm310_vm2, %v1365_v19  ;;  %v2204_v19 = vld [vmem:[%s3028_s6 + $0x8] sm:$0xff]  }
0x1146   :  { %2080 = vmatprep.mubr.msk.bf16.mxu1 %vm2264_vm3, %v2263_v51  ;;  %2077 = vmatpush3.bf16.msra.mxu1 %v2193_v45 }
0x1147   :  { %2078 = vmatprep.subr.bf16.mxu1 %v2263_v51 }
0x114a   :  { %2079 = vmatpush3.bf16.msra.mxu1 %v2194_v11 }
0x114b   :  { %2104 = vmatprep.subr.bf16.mxu1 %v2263_v51 }
0x1218   :  { %v1413_v20 = vpop.f32.mrb[36].mxu1 }
0x1219   :  { %v1414_v21 = vadd.f32 %v1413_v20, %v1369_v50  ;;  %v2074_v34 = vpop.f32.mrb[37].mxu1 }
0x121a   :  { %v1416_v26 = vpop.f32.mrb[38].mxu1 }
0x121b   :  { %v2930_v39 = vadd.f32 %v1414_v21, %v2752_v32  ;;  %v1417_v40 = vadd.f32 %v1416_v26, %v1369_v50  ;;  %v2075_v41 = vpop.f32.mrb[39].mxu1  ;;  %v1544_v50 = vrot.slane %v2782_v37, %v892_v52 }
0x121d   :  { %v2933_v46 = vadd.f32 %v1417_v40, %v2755_v33  ;;  %v1422_v47 = vsel %vm310_vm2, %v2930_v39, 0.0 }
0x121e   :  { %1423 = vadd.xlane.f32.xlu0 %v1422_v47 }
0x121f   :  { %v1425_v27 = vsel %vm310_vm2, %v2933_v46, 0.0 }
0x1220   :  { %1426 = vadd.xlane.f32.xlu1 %v1425_v27 }
0x12ab   :  { %v1424_v62 = vpop.xlane.xlu0 %1423 }
0x12ac   :  { %v1428_v48 = vmul.f32 0.03125, %v1424_v62  ;;  %v1829_v62 = vld [vmem:[%s3027_s5 + $0x2] ss:$0 sm:$0xff] }
0x12ad   :  { %v1427_v53 = vpop.xlane.xlu1 %1426 }
0x12ae   :  { %v1430_v49 = vsub.f32 %v2930_v39, %v1428_v48  ;;  %v1429_v32 = vmul.f32 0.03125, %v1427_v53 }
0x12b0   :  { %v1431_v54 = vsub.f32 %v2933_v46, %v1429_v32  ;;  %v1432_v60 = vmul.f32 %v1430_v49, %v1430_v49 }
0x12b2   :  { %v1434_v33 = vsel %vm310_vm2, %v1432_v60, 0.0  ;;  %v1433_v13 = vmul.f32 %v1431_v54, %v1431_v54 }
0x12b3   :  { %1435 = vadd.xlane.f32.xlu0 %v1434_v33 }
0x12b4   :  { %v1437_v38 = vsel %vm310_vm2, %v1433_v13, 0.0 }
0x12b7   :  { %1438 = vadd.xlane.f32.xlu0 %v1437_v38 }
0x1340   :  { %v1436_v5 = vpop.xlane.xlu0 %1435 }
0x1341   :  { %v1440_v58 = vmul.f32 0.03125, %v1436_v5 }
0x1343   :  { %v1442_v63 = vadd.f32 1e-05, %v1440_v58 }
0x1344   :  { %v1439_v16 = vpop.xlane.xlu0 %1438 }
0x1345   :  { %2233 = vrsqrt.f32 %v1442_v63  ;;  %v1441_v2 = vmul.f32 0.03125, %v1439_v16 }
0x1347   :  { %v1443_v55 = vadd.f32 1e-05, %v1441_v2 }
0x1349   :  { %2235 = vrsqrt.f32 %v1443_v55 }
0x134f   :  { %v2234_v1 = vpop.eup %2233 }
0x1350   :  { %v1446_v57 = vmul.f32 %v2234_v1, %v1430_v49 }
0x1352   :  { %v1452_v12 = vmul.f32 %v1451_v56, %v1446_v57 }
0x1353   :  { %v2236_v25 = vpop.eup %2235 }
0x1354   :  { %v1447_v24 = vmul.f32 %v2236_v25, %v1431_v54  ;;  %v1458_v61 = vadd.f32 %v1457_v31, %v1452_v12 }
0x1356   :  { %v1453_v14 = vmul.f32 %v1451_v56, %v1447_v24 }
0x1358   :  { %v1459_v22 = vadd.f32 %v1457_v31, %v1453_v14 }
0x135a   :  { %v1460_v23 = vpack.c.bf16 %v1459_v22, %v1458_v61 }
0x135c   :  { %2081 = vmatmul.mubr.msk.bf16.vlgmr.msra.gmra.mrb[40].mxu1 %vm310_vm2, %v1460_v23 }
0x135d   :  { %2108 = vmatprep.mubr.msk.bf16.mxu1 %vm2264_vm3, %v2263_v51  ;;  %2105 = vmatpush3.bf16.msra.mxu1 %v2203_v36 }
0x135e   :  { %2106 = vmatprep.subr.bf16.mxu1 %v2263_v51 }
0x1361   :  { %2107 = vmatpush3.bf16.msra.mxu1 %v2204_v19 }
0x142f   :  { %v1514_v30 = vpop.f32.mrb[40].mxu1 }
0x1430   :  { %v1515_v35 = vadd.f32 %v1801_v29, %v1514_v30  ;;  %v2082_v3 = vpop.f32.mrb[41].mxu1 }
0x1431   :  { %v1517_v6 = vpop.f32.mrb[42].mxu1 }
0x1432   :  { %v1518_v8 = vadd.f32 %v1801_v29, %v1517_v6  ;;  %v2083_v7 = vpop.f32.mrb[43].mxu1  ;;  %v1521_v10 = vmax.f32 %v1515_v35, 0.0 }
0x1434   :  { %v1522_v17 = vmax.f32 %v1518_v8, 0.0 }
0x1436   :  { %v1523_v18 = vpack.c.bf16 %v1522_v17, %v1521_v10 }
0x1438   :  { %2101 = vmatmul.mubr.bf16.vlgmr.msra.gmra.mrb[12].mxu0 %v1523_v18 }
0x150b   :  { %v1627_v20 = vpop.f32.mrb[12].mxu0 }
0x150c   :  { %v1628_v21 = vadd.f32 %v1627_v20, %v1544_v50  ;;  %v2102_v34 = vpop.f32.mrb[13].mxu0 }
0x150d   :  { %v1630_v26 = vpop.f32.mrb[14].mxu0 }
0x150e   :  { %v1631_v40 = vadd.f32 %v1630_v26, %v1544_v50  ;;  %v2103_v41 = vpop.f32.mrb[15].mxu0  ;;  %v1634_v47 = vadd.f32 %v1628_v21, %v2930_v39 }
0x1510   :  { %v1635_v27 = vadd.f32 %v1631_v40, %v2933_v46 }
0x1512   :  { %v1637_v51 = vpack.c.bf16 %v1635_v27, %v1634_v47 }
0x1514   :  { %2109 = vmatmul.mubr.msk.bf16.vlgmr.msra.gmra.mrb[44].mxu1 %vm310_vm2, %v1637_v51 }
0x15e7   :  { %v1695_v59 = vpop.f32.mrb[44].mxu1 }
0x15e8   :  { %v1696_v52 = vadd.f32 %v1829_v62, %v1695_v59  ;;  %v2110_v37 = vpop.f32.mrb[45].mxu1 }
0x15e9   :  { %v1698_v48 = vpop.f32.mrb[46].mxu1 }
0x15ea   :  { %1702 = vst [vmem:[#allocation2] sm:$0xff] %v1696_v52  ;;  %v1699_v53 = vadd.f32 %v1829_v62, %v1698_v48  ;;  %v2111_v49 = vpop.f32.mrb[47].mxu1 }
0x15ec   :  { %1703 = vst [vmem:[#allocation2 + $0x8] sm:$0xff] %v1699_v53 }
0x15ed   :  { %2248 = shalt.err (!%p2245_p4)
}
0x15ee   :  { %s2249_s23 = scalar_lea.hbm %s3029_s7, 256 }
0x15ef   :  { %p2250_p5 = scmp.ne.s32.totalorder %s3029_s7, %s2249_s23  ;;  %p2253_p6 = scmp.lt.u32.totalorder %s2249_s23, %s3029_s7 }
0x15f1   :  { %p2255_p7 = pnand %p2253_p6, %p2250_p5 }
0x15f3   :  { %2258 = shalt.err (!%p2255_p7)
}
0x15f4   :  { %s2273_s13 = smov 128   ;;  %s2274_s14 = smov 8  }
0x15f5   :  { %1715 = dma.vmem_to_hbm [thread:$0]  %s1710_s2, 256, %s3029_s7, [#allocation3], %s2273_s13, %s2273_s13, %s2274_s14  }
0x15f6   :  { %2259 = dma.done.wait [#allocation3], 256  }
0x15f7   :  { %2260 = vsyncadd [#allocation3], 4294967040 }
0x15f8   :  { %1719 = vsyncpa [#allocation3], 1 }

</bundles_post_ra>
